<compile_context>
chip_gen: v7x
topology: tpu7x:2x2x1
jax: 0.10.0
libtpu: 0.0.40
codegen_flags: <defaults>
</compile_context>

<pallas_src>
import functools

import jax
import jax.numpy as jnp
from jax import lax
from jax.experimental import pallas as pl
from jax.experimental.pallas import tpu as pltpu

# ---------------- configuration (small, deterministic) ----------------
EMB_DIM = 32                   # self.emb_dim
CONV_CH = 32                   # backbone conv channels
KSIZE = 3                      # backbone conv kernel size
TEMPERATURE = 1.0 / 64.0       # self.temperature
TEMP_CONTRASTIVE = 1.0 / 32.0  # self.temp_for_constrative (unused in forward)
IMGS_PER_BLOCK = 16            # imb*h = 256 (v6e/v7x MXU); set 8 on v5e
EMB_PAD = 128                  # embedding lanes padded to 128 (zero columns)


# ---------------- embedding kernel (backbone, one block of images) ----------------
def embed_kernel(x_ref, wconv_ref, bconv_ref, wfc_ref, bfc_ref, emb_ref, *, imb, h):
    """Backbone for one block of `imb` images.

    x_ref     : (imb*h, Kpad)        pre-gathered conv rows (im2row over h), bf16
    wconv_ref : (Kpad, w*CONV_CH)    fused banded conv weight, bf16
    bconv_ref : (1, w*CONV_CH)       conv bias tiled over w, f32
    wfc_ref   : (w*CONV_CH, EMB_PAD) FC weight tiled over w (GAP w-sum and
                                     1/(h*w) folded in), zero-padded lanes, bf16
    bfc_ref   : (1, EMB_PAD)         FC bias, zero-padded lanes, f32
    emb_ref   : (imb, EMB_PAD)       output embeddings, f32
    """
    # Single lane-dense MXU pass for the whole block's convolution.
    conv = jnp.dot(x_ref[...], wconv_ref[...], preferred_element_type=jnp.float32)
    hr = jnp.maximum(conv + bconv_ref[...], 0.0)                  # (imb*h, w*C)
    # Global average pool: h-sum here (XLU reduction); w-sum and the 1/(h*w)
    # scale are folded into the tiled FC weight.
    pooled = jnp.sum(hr.reshape(imb, h, hr.shape[-1]), axis=1)    # (imb, w*C)
    emb_ref[...] = jnp.dot(pooled.astype(jnp.bfloat16), wfc_ref[...],
                           preferred_element_type=jnp.float32) + bfc_ref[...]


# ---------------- ProtoNet head kernel (runs once) ----------------
def head_kernel(emb_ref, pmat_ref, yoh_ref, logits_ref, loss_ref, *, ns, nq):
    """Prototypes -> euclidean cdist -> temperature -> cross entropy."""
    sup = emb_ref[0:ns, :]                               # (ns, D)
    qry = emb_ref[ns:ns + nq, :]                         # (nq, D)
    protos = jnp.dot(pmat_ref[...], sup,
                     preferred_element_type=jnp.float32)  # (ways, D)

    # squared euclidean via ||q||^2 + ||p||^2 - 2 q.p  (MXU matmul)
    qp = lax.dot_general(qry, protos, (((1,), (1,)), ((), ())),
                         preferred_element_type=jnp.float32)       # (nq, ways)
    q2 = jnp.sum(qry * qry, axis=-1, keepdims=True)
    p2 = jnp.sum(protos * protos, axis=-1, keepdims=True)
    d2 = q2 + jnp.transpose(p2) - 2.0 * qp
    dist = jnp.sqrt(jnp.maximum(d2, 0.0))                # torch.cdist (p=2)

    logits = -dist * TEMPERATURE
    logits_ref[...] = logits

    # cross entropy (mean reduction, integer targets given as one-hot)
    m = jnp.max(logits, axis=-1, keepdims=True)
    lse = m + jnp.log(jnp.sum(jnp.exp(logits - m), axis=-1, keepdims=True))
    picked = jnp.sum(logits * yoh_ref[...], axis=-1, keepdims=True)
    loss_ref[0, 0] = jnp.mean(lse - picked)              # scalar -> SMEM


# ---------------- weight preprocessing (tiny, plain JAX, once) ----------------
def build_fused_conv_weight(wconv, w, cin):
    """wconv (K,K,cin,CONV_CH) -> (K*(w+2p)*cin, w*CONV_CH) fused banded matrix.

    Band structure: W[dh*wpc + (ww_p*cin + c), ww*CONV_CH + o] = wconv[dh, ww_p-ww, c, o]
    so  conv_out[r] = concat_dh(x_padded_row[r+dh]) @ W  == the 3x3 conv at row r.
    """
    pad = KSIZE // 2
    wp = w + 2 * pad
    w_idx = jnp.arange(w)
    bands = []
    for dh in range(KSIZE):
        acc = jnp.zeros((wp, w, cin, CONV_CH), jnp.float32)
        for dw in range(KSIZE):
            acc = acc.at[w_idx + dw, w_idx].set(wconv[dh, dw])
        bands.append(jnp.transpose(acc, (0, 2, 1, 3)).reshape(wp * cin, w * CONV_CH))
    return jnp.concatenate(bands, axis=0)


# ---------------- forward (mirrors ProtoNet.forward) ----------------
def protonet_forward(tasks, num_ways, params):
    """Mirrors ProtoNet.forward(tasks, num_ways) -> (loss, logits)."""
    x_support, x_query, y_support, y_query = tasks[0]
    del y_support  # unused in the PyTorch forward as well
    wconv, bconv, wfc, bfc = params                      # wconv: (K,K,Cin,CONV_CH)

    ns = x_support.shape[0]
    nq = x_query.shape[0]
    assert ns % num_ways == 0, "support size must be a multiple of num_ways"
    shots = ns // num_ways

    # One embedding pass over support + query (single batched pallas_call).
    x_all = jnp.concatenate([x_support, x_query], axis=0)   # (ntot, Cin, H, W)
    ntot, cin, hsz, wsz = x_all.shape
    pad = KSIZE // 2
    hp, wp = hsz + 2 * pad, wsz + 2 * pad
    wpc = wp * cin
    wcc = wsz * CONV_CH

    # NCHW -> NHWC, zero-pad spatially, flatten (W, C) into the lane axis,
    # then pre-gather the KSIZE shifted rows ("im2row" over h) so the conv is
    # a single matmul with a lane-dense K padded to a multiple of 128.
    x_nhwc = jnp.transpose(x_all, (0, 2, 3, 1)).astype(jnp.float32)
    x_p = jnp.pad(x_nhwc, ((0, 0), (pad, pad), (pad, pad), (0, 0)))
    x_rows = x_p.reshape(ntot, hp, wpc)
    x_win = jnp.concatenate([x_rows[:, dh:dh + hsz, :] for dh in range(KSIZE)],
                            axis=-1)                         # (ntot, h, K*wpc)
    kdim = KSIZE * wpc
    kpad = ((kdim + 127) // 128) * 128
    x_win = jnp.pad(x_win, ((0, 0), (0, 0), (0, kpad - kdim)))

    imb = min(IMGS_PER_BLOCK, ntot)
    ntot_pad = ((ntot + imb - 1) // imb) * imb
    if ntot_pad != ntot:
        x_win = jnp.pad(x_win, ((0, ntot_pad - ntot), (0, 0), (0, 0)))
    x2d = x_win.reshape(ntot_pad * hsz, kpad).astype(jnp.bfloat16)
    nblk = ntot_pad // imb

    # Weight transforms (independent of batch; cheap one-time preprocessing).
    wconv_f = build_fused_conv_weight(wconv, wsz, cin)       # (kdim, wcc)
    wconv_f = jnp.pad(wconv_f, ((0, kpad - kdim), (0, 0))).astype(jnp.bfloat16)
    bconv_t = jnp.tile(bconv.reshape(1, CONV_CH), (1, wsz)).astype(jnp.float32)
    inv_hw = 1.0 / float(hsz * wsz)
    wfc_exp = jnp.tile(wfc * inv_hw, (wsz, 1))               # GAP w-sum + scale folded
    wfc_exp = jnp.pad(wfc_exp, ((0, 0), (0, EMB_PAD - EMB_DIM))).astype(jnp.bfloat16)
    bfc_p = jnp.pad(bfc.reshape(1, EMB_DIM),
                    ((0, 0), (0, EMB_PAD - EMB_DIM))).astype(jnp.float32)

    # ---- embedding pass: one lane-dense MXU matmul per block of imb images ----
    # NOTE: when scaling up (e.g. 84x84x3 backbones), mark the weight operands
    # single-buffered (pipeline_mode=pl.Buffered(1)) to reclaim VMEM, and on
    # v7x (64 MiB VMEM) tile the conv over h or halve imb.  At this size the
    # grid is a single step, so extra buffering is moot.
    emb = pl.pallas_call(
        functools.partial(embed_kernel, imb=imb, h=hsz),
        grid=(nblk,),
        in_specs=[
            pl.BlockSpec((imb * hsz, kpad), lambda i: (i, 0)),           # images
            pl.BlockSpec((kpad, wcc), lambda i: (0, 0)),                 # fused conv W
            pl.BlockSpec((1, wcc), lambda i: (0, 0)),                    # conv bias
            pl.BlockSpec((wcc, EMB_PAD), lambda i: (0, 0)),              # FC weight
            pl.BlockSpec((1, EMB_PAD), lambda i: (0, 0)),                # FC bias
        ],
        out_specs=pl.BlockSpec((imb, EMB_PAD), lambda i: (i, 0)),
        out_shape=jax.ShapeDtypeStruct((ntot_pad, EMB_PAD), jnp.float32),
        compiler_params=pltpu.CompilerParams(
            # Blocks are independent -> "parallel" (both TensorCores on v7x).
            dimension_semantics=("parallel",),
            vmem_limit_bytes=32 * 1024 * 1024),
    )(x2d, wconv_f, bconv_t, wfc_exp, bfc_p)

    # Prototype (mean over consecutive shots) matrix and one-hot labels.
    pmat = jnp.repeat(jnp.eye(num_ways, dtype=jnp.float32), shots, axis=1) / shots
    y_onehot = jax.nn.one_hot(y_query, num_ways, dtype=jnp.float32)

    # ---- tiny ProtoNet head: one-step call (runs once; not the hot path) ----
    logits, loss = pl.pallas_call(
        functools.partial(head_kernel, ns=ns, nq=nq),
        grid=(1,),
        in_specs=[
            pl.BlockSpec((ntot_pad, EMB_PAD), lambda i: (0, 0)),         # embeddings
            pl.BlockSpec((num_ways, ns), lambda i: (0, 0)),              # proto matrix
            pl.BlockSpec((nq, num_ways), lambda i: (0, 0)),              # one-hot y
        ],
        out_specs=(
            pl.BlockSpec((nq, num_ways), lambda i: (0, 0)),              # logits
            pl.BlockSpec(memory_space=pltpu.MemorySpace.SMEM),           # loss
        ),
        out_shape=(jax.ShapeDtypeStruct((nq, num_ways), jnp.float32),
                   jax.ShapeDtypeStruct((1, 1), jnp.float32)),
        compiler_params=pltpu.CompilerParams(
            dimension_semantics=("arbitrary",)),
    )(emb, pmat, y_onehot)

    return loss[0, 0], logits


def init_params(key, cin):
    k1, k2, k3, k4 = jax.random.split(key, 4)
    wconv = 0.1 * jax.random.normal(k1, (KSIZE, KSIZE, cin, CONV_CH), jnp.float32)
    bconv = 0.1 * jax.random.normal(k2, (1, CONV_CH), jnp.float32)
    wfc = 0.1 * jax.random.normal(k3, (CONV_CH, EMB_DIM), jnp.float32)
    bfc = 0.1 * jax.random.normal(k4, (1, EMB_DIM), jnp.float32)
    return (wconv, bconv, wfc, bfc)


if __name__ == "__main__":
    num_ways, shots, queries_per_way = 4, 2, 2
    cin, hsz, wsz = 4, 16, 16

    key = jax.random.PRNGKey(0)
    kx1, kx2, kp = jax.random.split(key, 3)

    # PyTorch-layout (NCHW) episode tensors, ordered class-by-class so that
    # support_set.view(num_ways, -1, emb_dim) groups shots of the same class.
    x_support = jax.random.normal(kx1, (num_ways * shots, cin, hsz, wsz), jnp.float32)
    x_query = jax.random.normal(kx2, (num_ways * queries_per_way, cin, hsz, wsz), jnp.float32)
    y_support = jnp.repeat(jnp.arange(num_ways, dtype=jnp.int32), shots)
    y_query = jnp.repeat(jnp.arange(num_ways, dtype=jnp.int32), queries_per_way)

    params = init_params(kp, cin)
    tasks = [(x_support, x_query, y_support, y_query)]

    loss, logits = protonet_forward(tasks, num_ways, params)
    jax.block_until_ready((loss, logits))

    assert logits.shape == (num_ways * queries_per_way, num_ways)
    assert loss.shape == ()
    assert bool(jnp.isfinite(loss))
    print("KERNEL_OK")
</pallas_src>

<mosaic_0001>
module attributes {stable_mosaic.version = 11 : i64} {
  func.func @embed_kernel(%arg0: i32, %arg1: memref<256x256xbf16, #tpu.memory_space<vmem>>, %arg2: memref<256x512xbf16, #tpu.memory_space<vmem>>, %arg3: memref<1x512xf32, #tpu.memory_space<vmem>>, %arg4: memref<512x128xbf16, #tpu.memory_space<vmem>>, %arg5: memref<1x128xf32, #tpu.memory_space<vmem>>, %arg6: memref<16x128xf32, #tpu.memory_space<vmem>>) attributes {dimension_semantics = [#tpu.dimension_semantics<parallel>], iteration_bounds = array<i64: 1>, scalar_prefetch = 0 : i64, scratch_operands = 0 : i64, tpu.core_type = #tpu.core_type<tc>, window_params = [{transform_indices = @transform_0, window_bounds = array<i64: 256, 256>}, {pipeline_mode = #tpu.pipeline_mode<synchronous>, transform_indices = @transform_1, window_bounds = array<i64: 256, 512>}, {pipeline_mode = #tpu.pipeline_mode<synchronous>, transform_indices = @transform_2, window_bounds = array<i64: 1, 512>}, {pipeline_mode = #tpu.pipeline_mode<synchronous>, transform_indices = @transform_3, window_bounds = array<i64: 512, 128>}, {pipeline_mode = #tpu.pipeline_mode<synchronous>, transform_indices = @transform_4, window_bounds = array<i64: 1, 128>}, {transform_indices = @transform_5, window_bounds = array<i64: 16, 128>}]} {
    %c0 = arith.constant 0 : index
    %c0_0 = arith.constant 0 : index
    %0 = vector.load %arg1[%c0, %c0_0] : memref<256x256xbf16, #tpu.memory_space<vmem>>, vector<256x256xbf16>
    %c0_1 = arith.constant 0 : index
    %c0_2 = arith.constant 0 : index
    %1 = vector.load %arg2[%c0_1, %c0_2] : memref<256x512xbf16, #tpu.memory_space<vmem>>, vector<256x512xbf16>
    %cst = arith.constant dense<0.000000e+00> : vector<256x512xf32>
    %2 = tpu.matmul %0, %1, %cst {dimension_numbers = #tpu.dot_dimension_numbers<[1], [0], [0], [1], [0, 0, 1, 1], [], []>} : vector<256x256xbf16>, vector<256x512xbf16>, vector<256x512xf32> -> vector<256x512xf32>
    %c0_3 = arith.constant 0 : index
    %c0_4 = arith.constant 0 : index
    %3 = vector.load %arg3[%c0_3, %c0_4] : memref<1x512xf32, #tpu.memory_space<vmem>>, vector<1x512xf32>
    %4 = vector.broadcast %3 : vector<1x512xf32> to vector<256x512xf32>
    %5 = arith.addf %2, %4 : vector<256x512xf32>
    %cst_5 = arith.constant 0.000000e+00 : f32
    %6 = vector.broadcast %cst_5 : f32 to vector<256x512xf32>
    %7 = arith.maximumf %5, %6 : vector<256x512xf32>
    %8 = vector.shape_cast %7 : vector<256x512xf32> to vector<16x16x512xf32>
    %cst_6 = arith.constant dense<0.000000e+00> : vector<16x512xf32>
    %9 = vector.multi_reduction <add>, %8, %cst_6 [1] : vector<16x16x512xf32> to vector<16x512xf32>
    %10 = arith.truncf %9 : vector<16x512xf32> to vector<16x512xbf16>
    %c0_7 = arith.constant 0 : index
    %c0_8 = arith.constant 0 : index
    %11 = vector.load %arg4[%c0_7, %c0_8] : memref<512x128xbf16, #tpu.memory_space<vmem>>, vector<512x128xbf16>
    %cst_9 = arith.constant dense<0.000000e+00> : vector<16x128xf32>
    %12 = tpu.matmul %10, %11, %cst_9 {dimension_numbers = #tpu.dot_dimension_numbers<[1], [0], [0], [1], [0, 0, 1, 1], [], []>} : vector<16x512xbf16>, vector<512x128xbf16>, vector<16x128xf32> -> vector<16x128xf32>
    %c0_10 = arith.constant 0 : index
    %c0_11 = arith.constant 0 : index
    %13 = vector.load %arg5[%c0_10, %c0_11] : memref<1x128xf32, #tpu.memory_space<vmem>>, vector<1x128xf32>
    %14 = vector.broadcast %13 : vector<1x128xf32> to vector<16x128xf32>
    %15 = arith.addf %12, %14 : vector<16x128xf32>
    %c0_12 = arith.constant 0 : index
    %c0_13 = arith.constant 0 : index
    %16 = vector.load %arg6[%c0_12, %c0_13] : memref<16x128xf32, #tpu.memory_space<vmem>>, vector<16x128xf32>
    tpu.vector_store %arg6[%c0_12, %c0_13], %15 {strides = array<i32>} : memref<16x128xf32, #tpu.memory_space<vmem>>, vector<16x128xf32>,
    return
  }
  func.func @transform_0(%arg0: i32) -> (i32, i32) {
    %c0_i32 = arith.constant 0 : i32
    %c0_i32_0 = arith.constant 0 : i32
    return %arg0, %c0_i32 : i32, i32
  }
  func.func @transform_1(%arg0: i32) -> (i32, i32) {
    %c0_i32 = arith.constant 0 : i32
    %c0_i32_0 = arith.constant 0 : i32
    %c0_i32_1 = arith.constant 0 : i32
    return %c0_i32, %c0_i32_0 : i32, i32
  }
  func.func @transform_2(%arg0: i32) -> (i32, i32) {
    %c0_i32 = arith.constant 0 : i32
    %c0_i32_0 = arith.constant 0 : i32
    %c0_i32_1 = arith.constant 0 : i32
    return %c0_i32, %c0_i32_0 : i32, i32
  }
  func.func @transform_3(%arg0: i32) -> (i32, i32) {
    %c0_i32 = arith.constant 0 : i32
    %c0_i32_0 = arith.constant 0 : i32
    %c0_i32_1 = arith.constant 0 : i32
    return %c0_i32, %c0_i32_0 : i32, i32
  }
  func.func @transform_4(%arg0: i32) -> (i32, i32) {
    %c0_i32 = arith.constant 0 : i32
    %c0_i32_0 = arith.constant 0 : i32
    %c0_i32_1 = arith.constant 0 : i32
    return %c0_i32, %c0_i32_0 : i32, i32
  }
  func.func @transform_5(%arg0: i32) -> (i32, i32) {
    %c0_i32 = arith.constant 0 : i32
    %c0_i32_0 = arith.constant 0 : i32
    return %arg0, %c0_i32 : i32, i32
  }
}

</mosaic_0001>

<bundles_post_ra>
// kernel: tpu_custom_call.1
= control target key start
LH: loop header
LB: loop body
LE: loop exit
PB: predicated region body
PF: predicated region fallthrough
CT: control target
= control target key end

     0   :  { %10 = vsyncpa [#allocation3], 0  ;;  %s3460_s0 = inlined_call_operand.hbm [shape: bf16[256,256], index: 0, kind: input, shape index: {}]   ;;  %s3461_s1 = inlined_call_operand.hbm [shape: bf16[256,512], index: 1, kind: input, shape index: {}]   ;;  %s3462_s2 = inlined_call_operand.vmem [shape: f32[1,512], index: 2, kind: input, shape index: {}]   ;;  %s3463_s3 = inlined_call_operand.hbm [shape: bf16[512,128], index: 3, kind: input, shape index: {}]   ;;  %s3464_s4 = inlined_call_operand.vmem [shape: f32[1,128], index: 4, kind: input, shape index: {}]   ;;  %s3465_s5 = inlined_call_operand.hbm [shape: f32[16,128], index: 5, kind: output, shape index: {}]  }
   0x1   :  { %11 = vsyncpa [#allocation6], 0 }
   0x2   :  { %12 = vsyncpa [#allocation4], 0  ;;  %s2704_s18 = smov [#allocation5]   ;;  %s2610_s22 = scalar_lea.hbm %s3461_s1, 8192 }
   0x3   :  { %s30_s19 = sshll.u32 %s2704_s18, 4  ;;  %p2611_p0 = scmp.ne.s32.totalorder %s3461_s1, %s2610_s22  ;;  %s31_s19 = int_to_ptr.vmem [resolvable:$true] %s30_s19 }
   0x4   :  { %p2614_p1 = scmp.lt.u32.totalorder %s2610_s22, %s3461_s1 }
   0x6   :  { %p2616_p2 = pnand %p2614_p1, %p2611_p0 }
   0x8   :  { %2619 = shalt.err (!%p2616_p2)
}
   0x9   :  { %s2620_s27 = scalar_lea.vmem %s31_s19, 8192  ;;  %p2625_p4 = scmp.lt.s32.totalorder %s31_s19, %s31_s19 }
   0xa   :  { %p2621_p3 = scmp.ne.s32.totalorder %s31_s19, %s2620_s27  ;;  %p2626_p5 = scmp.lt.s32.totalorder %s2620_s27, %s2620_s27 }
   0xc   :  { %p2627_p6 = por %p2626_p5, %p2625_p4 }
   0xe   :  { %p2628_p7 = pnand %p2627_p6, %p2621_p3 }
  0x10   :  { %2631 = shalt.err (!%p2628_p7)
}
  0x11   :  { %s2705_s28 = smov 256   ;;  %s2706_s29 = smov 16  }
  0x12   :  { %36 = dma.hbm_to_vmem [thread:$0]  %s3461_s1, 8192, %s31_s19, [#allocation6], %s2705_s28, %s2705_s28, %s2706_s29  }
  0x13   :  { %s2707_s7 = smov [#allocation2]   ;;  %s2632_s11 = scalar_lea.hbm %s3460_s0, 4096 }
  0x14   :  { %s18_s8 = sshll.u32 %s2707_s7, 4  ;;  %p2633_p8 = scmp.ne.s32.totalorder %s3460_s0, %s2632_s11  ;;  %s19_s8 = int_to_ptr.vmem [resolvable:$true] %s18_s8 }
  0x15   :  { %p2636_p9 = scmp.lt.u32.totalorder %s2632_s11, %s3460_s0 }
  0x17   :  { %p2638_p10 = pnand %p2636_p9, %p2633_p8 }
  0x19   :  { %2641 = shalt.err (!%p2638_p10)
}
  0x1a   :  { %s2642_s16 = scalar_lea.vmem %s19_s8, 4096  ;;  %p2647_p12 = scmp.lt.s32.totalorder %s19_s8, %s19_s8 }
  0x1b   :  { %p2643_p11 = scmp.ne.s32.totalorder %s19_s8, %s2642_s16  ;;  %p2648_p13 = scmp.lt.s32.totalorder %s2642_s16, %s2642_s16 }
  0x1d   :  { %p2649_p0 = por %p2648_p13, %p2647_p12 }
  0x1f   :  { %p2650_p1 = pnand %p2649_p0, %p2643_p11 }
  0x21   :  { %2653 = shalt.err (!%p2650_p1)
}
  0x22   :  { %s2708_s1 = smov 128   ;;  %s2709_s17 = smov 8  }
  0x23   :  { %24 = dma.hbm_to_vmem [thread:$0]  %s3460_s0, 4096, %s19_s8, [#allocation3], %s2708_s1, %s2708_s1, %s2709_s17  }
  0x24   :  { %s2710_s20 = smov [#allocation7]   ;;  %s2654_s24 = scalar_lea.hbm %s3463_s3, 4096 }
  0x25   :  { %s44_s21 = sshll.u32 %s2710_s20, 4  ;;  %p2655_p2 = scmp.ne.s32.totalorder %s3463_s3, %s2654_s24  ;;  %s45_s21 = int_to_ptr.vmem [resolvable:$true] %s44_s21 }
  0x26   :  { %p2658_p3 = scmp.lt.u32.totalorder %s2654_s24, %s3463_s3 }
  0x28   :  { %p2660_p4 = pnand %p2658_p3, %p2655_p2 }
  0x2a   :  { %2663 = shalt.err (!%p2660_p4)
}
  0x2b   :  { %s2664_s29 = scalar_lea.vmem %s45_s21, 4096  ;;  %p2669_p6 = scmp.lt.s32.totalorder %s45_s21, %s45_s21 }
  0x2c   :  { %p2665_p5 = scmp.ne.s32.totalorder %s45_s21, %s2664_s29  ;;  %p2670_p7 = scmp.lt.s32.totalorder %s2664_s29, %s2664_s29 }
  0x2e   :  { %p2671_p8 = por %p2670_p7, %p2669_p6 }
  0x30   :  { %p2672_p9 = pnand %p2671_p8, %p2665_p5 }
  0x32   :  { %2675 = shalt.err (!%p2672_p9)
}
  0x33   :  { %s2711_s0 = smov 64   ;;  %s2712_s30 = smov 4  }
  0x34   :  { %50 = dma.hbm_to_vmem [thread:$0]  %s3463_s3, 4096, %s45_s21, [#allocation6], %s2711_s0, %s2711_s0, %s2712_s30  }
  0x35   :  { %2698 = dma.done.wait [#allocation3], 4096  }
  0x36   :  { %2699 = vsyncadd [#allocation3], 4294963200 }
  0x37   :  { %2700 = dma.done.wait [#allocation6], 12288  }
  0x38   :  { %2701 = vsyncadd [#allocation6], 4294955008  ;;  %v2434_v0 = vld [vmem:[#allocation5 + $0x4] ss:$16 sps:$4 sm:$0xff]   ;;  %v2436_v1 = vld [vmem:[#allocation5 + $0xc] ss:$16 sps:$4 sm:$0xff]  }
  0x39   :  { %661 = vmatprep.subr.bf16.mxu0 %v2434_v0  ;;  %v2438_v2 = vld [vmem:[#allocation5] ss:$16 sps:$4 sm:$0xff]   ;;  %v2439_v3 = vld [vmem:[#allocation5 + $0x8] ss:$16 sps:$4 sm:$0xff]   ;;  %854 = vmatprep.subr.bf16.mxu1 %v2436_v1  ;;  %v2440_v4 = vld [vmem:[#allocation5 + $0x24] ss:$16 sps:$4 sm:$0xff]  }
  0x3a   :  { %662 = vmatpush1.bf16.msra.mxu0 %v2438_v2  ;;  %855 = vmatpush1.bf16.msra.mxu1 %v2439_v3  ;;  %v2442_v5 = vld [vmem:[#allocation5 + $0x2c] ss:$16 sps:$4 sm:$0xff]   ;;  %v2444_v6 = vld [vmem:[#allocation5 + $0x20] ss:$16 sps:$4 sm:$0xff]   ;;  %v2445_v7 = vld [vmem:[#allocation5 + $0x28] ss:$16 sps:$4 sm:$0xff]  }
  0x3b   :  { %663 = vmatprep.subr.bf16.mxu0 %v2440_v4  ;;  %856 = vmatprep.subr.bf16.mxu1 %v2442_v5  ;;  %v2446_v8 = vld [vmem:[#allocation5 + $0x44] ss:$16 sps:$4 sm:$0xff]   ;;  %v2448_v9 = vld [vmem:[#allocation5 + $0x4c] ss:$16 sps:$4 sm:$0xff]   ;;  %v2450_v10 = vld [vmem:[#allocation5 + $0x40] ss:$16 sps:$4 sm:$0xff]  }
  0x3c   :  { %v2451_v11 = vld [vmem:[#allocation5 + $0x48] ss:$16 sps:$4 sm:$0xff]   ;;  %v2452_v12 = vld [vmem:[#allocation5 + $0x64] ss:$16 sps:$4 sm:$0xff]   ;;  %v2454_v13 = vld [vmem:[#allocation5 + $0x6c] ss:$16 sps:$4 sm:$0xff]  }
  0x3d   :  { %v2456_v14 = vld [vmem:[#allocation5 + $0x60] ss:$16 sps:$4 sm:$0xff]   ;;  %v2457_v15 = vld [vmem:[#allocation5 + $0x68] ss:$16 sps:$4 sm:$0xff]   ;;  %v2458_v16 = vld [vmem:[#allocation5 + $0x84] ss:$16 sps:$4 sm:$0xff]  }
  0x3e   :  { %664 = vmatpush1.bf16.msra.mxu0 %v2444_v6  ;;  %857 = vmatpush1.bf16.msra.mxu1 %v2445_v7  ;;  %v2460_v17 = vld [vmem:[#allocation5 + $0x8c] ss:$16 sps:$4 sm:$0xff]   ;;  %v2462_v18 = vld [vmem:[#allocation5 + $0x80] ss:$16 sps:$4 sm:$0xff]   ;;  %v2463_v19 = vld [vmem:[#allocation5 + $0x88] ss:$16 sps:$4 sm:$0xff]  }
  0x3f   :  { %665 = vmatprep.subr.bf16.mxu0 %v2446_v8  ;;  %858 = vmatprep.subr.bf16.mxu1 %v2448_v9  ;;  %v2464_v20 = vld [vmem:[#allocation5 + $0xa4] ss:$16 sps:$4 sm:$0xff]   ;;  %v2466_v21 = vld [vmem:[#allocation5 + $0xac] ss:$16 sps:$4 sm:$0xff]   ;;  %v2468_v22 = vld [vmem:[#allocation5 + $0xa0] ss:$16 sps:$4 sm:$0xff]  }
  0x40   :  { %v2469_v23 = vld [vmem:[#allocation5 + $0xa8] ss:$16 sps:$4 sm:$0xff]   ;;  %v2470_v24 = vld [vmem:[#allocation5 + $0xc4] ss:$16 sps:$4 sm:$0xff]   ;;  %v2472_v25 = vld [vmem:[#allocation5 + $0xcc] ss:$16 sps:$4 sm:$0xff]  }
  0x41   :  { %v2474_v26 = vld [vmem:[#allocation5 + $0xc0] ss:$16 sps:$4 sm:$0xff]   ;;  %v2475_v27 = vld [vmem:[#allocation5 + $0xc8] ss:$16 sps:$4 sm:$0xff]   ;;  %v2476_v28 = vld [vmem:[#allocation5 + $0xe4] ss:$16 sps:$4 sm:$0xff]  }
  0x42   :  { %666 = vmatpush1.bf16.msra.mxu0 %v2450_v10  ;;  %859 = vmatpush1.bf16.msra.mxu1 %v2451_v11  ;;  %v2478_v29 = vld [vmem:[#allocation5 + $0xec] ss:$16 sps:$4 sm:$0xff]   ;;  %v2480_v30 = vld [vmem:[#allocation5 + $0xe0] ss:$16 sps:$4 sm:$0xff]   ;;  %v2481_v31 = vld [vmem:[#allocation5 + $0xe8] ss:$16 sps:$4 sm:$0xff]  }
  0x43   :  { %667 = vmatprep.subr.bf16.mxu0 %v2452_v12  ;;  %860 = vmatprep.subr.bf16.mxu1 %v2454_v13  ;;  %v2482_v32 = vld [vmem:[#allocation5 + $0x104] ss:$16 sps:$4 sm:$0xff]   ;;  %v2484_v33 = vld [vmem:[#allocation5 + $0x10c] ss:$16 sps:$4 sm:$0xff]   ;;  %v2486_v34 = vld [vmem:[#allocation5 + $0x100] ss:$16 sps:$4 sm:$0xff]  }
  0x44   :  { %v2487_v35 = vld [vmem:[#allocation5 + $0x108] ss:$16 sps:$4 sm:$0xff]   ;;  %v2488_v36 = vld [vmem:[#allocation5 + $0x124] ss:$16 sps:$4 sm:$0xff]   ;;  %v2490_v37 = vld [vmem:[#allocation5 + $0x12c] ss:$16 sps:$4 sm:$0xff]  }
  0x45   :  { %v2492_v38 = vld [vmem:[#allocation5 + $0x120] ss:$16 sps:$4 sm:$0xff]   ;;  %v2493_v39 = vld [vmem:[#allocation5 + $0x128] ss:$16 sps:$4 sm:$0xff]   ;;  %v2494_v40 = vld [vmem:[#allocation5 + $0x144] ss:$16 sps:$4 sm:$0xff]  }
  0x46   :  { %668 = vmatpush1.bf16.msra.mxu0 %v2456_v14  ;;  %861 = vmatpush1.bf16.msra.mxu1 %v2457_v15  ;;  %v2496_v41 = vld [vmem:[#allocation5 + $0x14c] ss:$16 sps:$4 sm:$0xff]   ;;  %v2498_v42 = vld [vmem:[#allocation5 + $0x140] ss:$16 sps:$4 sm:$0xff]   ;;  %v2499_v43 = vld [vmem:[#allocation5 + $0x148] ss:$16 sps:$4 sm:$0xff]  }
  0x47   :  { %669 = vmatprep.subr.bf16.mxu0 %v2458_v16  ;;  %862 = vmatprep.subr.bf16.mxu1 %v2460_v17  ;;  %v2500_v44 = vld [vmem:[#allocation5 + $0x164] ss:$16 sps:$4 sm:$0xff]   ;;  %v2502_v45 = vld [vmem:[#allocation5 + $0x16c] ss:$16 sps:$4 sm:$0xff]   ;;  %v2504_v46 = vld [vmem:[#allocation5 + $0x160] ss:$16 sps:$4 sm:$0xff]  }
  0x48   :  { %v2505_v47 = vld [vmem:[#allocation5 + $0x168] ss:$16 sps:$4 sm:$0xff]   ;;  %v2532_v48 = vld [vmem:[#allocation2 + $0x4] ss:$8 sps:$4 sm:$0xff]   ;;  %v2510_v51 = vld [vmem:[#allocation5 + $0x180] ss:$16 sps:$4 sm:$0xff]  }
  0x49   :  { %v2506_v49 = vld [vmem:[#allocation5 + $0x184] ss:$16 sps:$4 sm:$0xff]   ;;  %v2508_v50 = vld [vmem:[#allocation5 + $0x18c] ss:$16 sps:$4 sm:$0xff]   ;;  %693 = vmatprep.mubr.bf16.mxu0 %v2532_v48  ;;  %886 = vmatprep.mubr.bf16.mxu1 %v2532_v48  ;;  %v2511_v52 = vld [vmem:[#allocation5 + $0x188] ss:$16 sps:$4 sm:$0xff]  }
  0x4a   :  { %670 = vmatpush1.bf16.msra.mxu0 %v2462_v18  ;;  %863 = vmatpush1.bf16.msra.mxu1 %v2463_v19  ;;  %v2512_v53 = vld [vmem:[#allocation5 + $0x1a4] ss:$16 sps:$4 sm:$0xff]   ;;  %v2514_v54 = vld [vmem:[#allocation5 + $0x1ac] ss:$16 sps:$4 sm:$0xff]   ;;  %v2516_v55 = vld [vmem:[#allocation5 + $0x1a0] ss:$16 sps:$4 sm:$0xff]  }
  0x4b   :  { %671 = vmatprep.subr.bf16.mxu0 %v2464_v20  ;;  %864 = vmatprep.subr.bf16.mxu1 %v2466_v21  ;;  %v2517_v56 = vld [vmem:[#allocation5 + $0x1a8] ss:$16 sps:$4 sm:$0xff]   ;;  %v2518_v57 = vld [vmem:[#allocation5 + $0x1c4] ss:$16 sps:$4 sm:$0xff]   ;;  %v2520_v58 = vld [vmem:[#allocation5 + $0x1cc] ss:$16 sps:$4 sm:$0xff]  }
  0x4c   :  { %v2522_v59 = vld [vmem:[#allocation5 + $0x1c0] ss:$16 sps:$4 sm:$0xff]   ;;  %v2523_v60 = vld [vmem:[#allocation5 + $0x1c8] ss:$16 sps:$4 sm:$0xff]   ;;  %v2524_v61 = vld [vmem:[#allocation5 + $0x1e4] ss:$16 sps:$4 sm:$0xff]  }
  0x4d   :  { %v2526_v62 = vld [vmem:[#allocation5 + $0x1ec] ss:$16 sps:$4 sm:$0xff]   ;;  %v2528_v63 = vld [vmem:[#allocation5 + $0x1e0] ss:$16 sps:$4 sm:$0xff]   ;;  %v2529_v0 = vld [vmem:[#allocation5 + $0x1e8] ss:$16 sps:$4 sm:$0xff]  }
  0x4e   :  { %672 = vmatpush1.bf16.msra.mxu0 %v2468_v22  ;;  %865 = vmatpush1.bf16.msra.mxu1 %v2469_v23  ;;  %v2530_v1 = vld [vmem:[#allocation2] ss:$8 sps:$4 sm:$0xff]   ;;  %v2533_v2 = vld [vmem:[#allocation2 + $0x14] ss:$8 sps:$4 sm:$0xff]   ;;  %v2535_v3 = vld [vmem:[#allocation2 + $0x10] ss:$8 sps:$4 sm:$0xff]  }
  0x4f   :  { %673 = vmatprep.subr.bf16.mxu0 %v2470_v24  ;;  %866 = vmatprep.subr.bf16.mxu1 %v2472_v25  ;;  %v2536_v4 = vld [vmem:[#allocation2 + $0x24] ss:$8 sps:$4 sm:$0xff]   ;;  %v2538_v5 = vld [vmem:[#allocation2 + $0x20] ss:$8 sps:$4 sm:$0xff]   ;;  %v2539_v6 = vld [vmem:[#allocation2 + $0x34] ss:$8 sps:$4 sm:$0xff]  }
  0x50   :  { %v2541_v7 = vld [vmem:[#allocation2 + $0x30] ss:$8 sps:$4 sm:$0xff]   ;;  %v2542_v8 = vld [vmem:[#allocation2 + $0x44] ss:$8 sps:$4 sm:$0xff]   ;;  %v2544_v9 = vld [vmem:[#allocation2 + $0x40] ss:$8 sps:$4 sm:$0xff]  }
  0x51   :  { %v2545_v10 = vld [vmem:[#allocation2 + $0x54] ss:$8 sps:$4 sm:$0xff]   ;;  %v2547_v11 = vld [vmem:[#allocation2 + $0x50] ss:$8 sps:$4 sm:$0xff]   ;;  %v2548_v12 = vld [vmem:[#allocation2 + $0x64] ss:$8 sps:$4 sm:$0xff]  }
  0x52   :  { %674 = vmatpush1.bf16.msra.mxu0 %v2474_v26  ;;  %867 = vmatpush1.bf16.msra.mxu1 %v2475_v27  ;;  %v2550_v13 = vld [vmem:[#allocation2 + $0x60] ss:$8 sps:$4 sm:$0xff]   ;;  %v2551_v14 = vld [vmem:[#allocation2 + $0x74] ss:$8 sps:$4 sm:$0xff]   ;;  %v2553_v15 = vld [vmem:[#allocation2 + $0x70] ss:$8 sps:$4 sm:$0xff]  }
  0x53   :  { %675 = vmatprep.subr.bf16.mxu0 %v2476_v28  ;;  %868 = vmatprep.subr.bf16.mxu1 %v2478_v29  ;;  %v2554_v16 = vld [vmem:[#allocation2 + $0x84] ss:$8 sps:$4 sm:$0xff]   ;;  %v2556_v17 = vld [vmem:[#allocation2 + $0x80] ss:$8 sps:$4 sm:$0xff]   ;;  %v2557_v18 = vld [vmem:[#allocation2 + $0x94] ss:$8 sps:$4 sm:$0xff]  }
  0x54   :  { %v2559_v19 = vld [vmem:[#allocation2 + $0x90] ss:$8 sps:$4 sm:$0xff]   ;;  %v2560_v20 = vld [vmem:[#allocation2 + $0xa4] ss:$8 sps:$4 sm:$0xff]   ;;  %v2562_v21 = vld [vmem:[#allocation2 + $0xa0] ss:$8 sps:$4 sm:$0xff]  }
  0x55   :  { %v2563_v22 = vld [vmem:[#allocation2 + $0xb4] ss:$8 sps:$4 sm:$0xff]   ;;  %v2565_v23 = vld [vmem:[#allocation2 + $0xb0] ss:$8 sps:$4 sm:$0xff]   ;;  %v2566_v24 = vld [vmem:[#allocation2 + $0xc4] ss:$8 sps:$4 sm:$0xff]  }
  0x56   :  { %676 = vmatpush1.bf16.msra.mxu0 %v2480_v30  ;;  %869 = vmatpush1.bf16.msra.mxu1 %v2481_v31  ;;  %v2568_v25 = vld [vmem:[#allocation2 + $0xc0] ss:$8 sps:$4 sm:$0xff]   ;;  %v2569_v26 = vld [vmem:[#allocation2 + $0xd4] ss:$8 sps:$4 sm:$0xff]   ;;  %v2571_v27 = vld [vmem:[#allocation2 + $0xd0] ss:$8 sps:$4 sm:$0xff]  }
  0x57   :  { %677 = vmatprep.subr.bf16.mxu0 %v2482_v32  ;;  %870 = vmatprep.subr.bf16.mxu1 %v2484_v33  ;;  %v2572_v28 = vld [vmem:[#allocation2 + $0xe4] ss:$8 sps:$4 sm:$0xff]   ;;  %v2574_v29 = vld [vmem:[#allocation2 + $0xe0] ss:$8 sps:$4 sm:$0xff]   ;;  %v2575_v30 = vld [vmem:[#allocation2 + $0xf4] ss:$8 sps:$4 sm:$0xff]  }
  0x58   :  { %v2577_v31 = vld [vmem:[#allocation2 + $0xf0] ss:$8 sps:$4 sm:$0xff]   ;;  %v2578_v32 = vld [vmem:[#allocation7 + $0x40] sm:$0xff]   ;;  %vm1886_vm0 = vcmask 1041409   ;;  %vm1888_vm1 = vcmask 1042434   ;;  %vm1890_vm2 = vcmask 1043459  }
  0x59   :  { %v2579_v33 = vld [vmem:[#allocation7] sm:$0xff]   ;;  %vm1892_vm3 = vcmask 1044484   ;;  %vm1894_vm4 = vcmask 1045509   ;;  %vm1896_vm5 = vcmask 1046534   ;;  %vm1898_vm6 = vcmask 1047559   ;;  %s2713_s10 = smov [#allocation8]  }
  0x5a   :  { %678 = vmatpush1.bf16.msra.mxu0 %v2486_v34  ;;  %871 = vmatpush1.bf16.msra.mxu1 %v2487_v35  ;;  %v2580_v34 = vld [vmem:[#allocation7 + $0xc0] sm:$0xff]   ;;  %s2238_s11 = sshll.u32 %s2713_s10, 4  ;;  %s2239_s11 = int_to_ptr.vmem [resolvable:$true] %s2238_s11 }
  0x5b   :  { %679 = vmatprep.subr.bf16.mxu0 %v2488_v36  ;;  %872 = vmatprep.subr.bf16.mxu1 %v2490_v37  ;;  %v2581_v35 = vld [vmem:[#allocation7 + $0x80] sm:$0xff]   ;;  %v2582_v36 = vld [vmem:[#allocation7 + $0x48] sm:$0xff]   ;;  %p2681_p11 = scmp.lt.s32.totalorder %s2239_s11, %s2239_s11 }
  0x5c   :  { %v2583_v37 = vld [vmem:[#allocation7 + $0x8] sm:$0xff]   ;;  %v159_v48 = vld [vmem:[%s3462_s2] sm:$0xf] }
  0x5e   :  { %680 = vmatpush1.bf16.msra.mxu0 %v2492_v38  ;;  %873 = vmatpush1.bf16.msra.mxu1 %v2493_v39  ;;  %v2584_v38 = vld [vmem:[#allocation7 + $0xc8] sm:$0xff]  }
  0x5f   :  { %681 = vmatprep.subr.bf16.mxu0 %v2494_v40  ;;  %874 = vmatprep.subr.bf16.mxu1 %v2496_v41  ;;  %v2585_v39 = vld [vmem:[#allocation7 + $0x88] sm:$0xff]   ;;  %v2586_v40 = vld [vmem:[#allocation7 + $0x50] sm:$0xff]  }
  0x60   :  { %v2587_v41 = vld [vmem:[#allocation7 + $0x10] sm:$0xff]  }
  0x62   :  { %682 = vmatpush1.bf16.msra.mxu0 %v2498_v42  ;;  %875 = vmatpush1.bf16.msra.mxu1 %v2499_v43  ;;  %v2588_v42 = vld [vmem:[#allocation7 + $0xd0] sm:$0xff]  }
  0x63   :  { %683 = vmatprep.subr.bf16.mxu0 %v2500_v44  ;;  %876 = vmatprep.subr.bf16.mxu1 %v2502_v45  ;;  %v2589_v43 = vld [vmem:[#allocation7 + $0x90] sm:$0xff]   ;;  %v161_v44 = vlaneseq }
  0x65   :  { %v162_v45 = vshrl.u32 %v161_v44, 7 }
  0x66   :  { %684 = vmatpush1.bf16.msra.mxu0 %v2504_v46  ;;  %877 = vmatpush1.bf16.msra.mxu1 %v2505_v47 }
  0x67   :  { %685 = vmatprep.subr.bf16.mxu0 %v2506_v49  ;;  %878 = vmatprep.subr.bf16.mxu1 %v2508_v50  ;;  %v163_v46 = vsub.s32 0, %v162_v45  ;;  %v171_v47 = vsub.s32 2, %v162_v45  ;;  %v167_v49 = vsub.s32 1, %v162_v45  ;;  %v175_v50 = vsub.s32 3, %v162_v45 }
  0x6a   :  { %686 = vmatpush1.bf16.msra.mxu0 %v2510_v51  ;;  %879 = vmatpush1.bf16.msra.mxu1 %v2511_v52  ;;  %v2786_v51 = vrot.slane %v159_v48, %v163_v46  ;;  %v2788_v52 = vrot.slane %v159_v48, %v171_v47 }
  0x6b   :  { %687 = vmatprep.subr.bf16.mxu0 %v2512_v53  ;;  %880 = vmatprep.subr.bf16.mxu1 %v2514_v54  ;;  %v2790_v53 = vrot.slane %v159_v48, %v167_v49  ;;  %v2792_v54 = vrot.slane %v159_v48, %v175_v50 }
  0x6e   :  { %688 = vmatpush1.bf16.msra.mxu0 %v2516_v55  ;;  %881 = vmatpush1.bf16.msra.mxu1 %v2517_v56 }
  0x6f   :  { %689 = vmatprep.subr.bf16.mxu0 %v2518_v57  ;;  %882 = vmatprep.subr.bf16.mxu1 %v2520_v58 }
  0x72   :  { %690 = vmatpush1.bf16.msra.mxu0 %v2522_v59  ;;  %883 = vmatpush1.bf16.msra.mxu1 %v2523_v60 }
  0x73   :  { %691 = vmatprep.subr.bf16.mxu0 %v2524_v61  ;;  %884 = vmatprep.subr.bf16.mxu1 %v2526_v62 }
  0x76   :  { %692 = vmatpush1.bf16.msra.mxu0 %v2528_v63  ;;  %885 = vmatpush1.bf16.msra.mxu1 %v2529_v0 }
  0x77   :  { %2380 = vmatprep.subr.bf16.mxu0 %v2578_v32  ;;  %2402 = vmatprep.subr.bf16.mxu1 %v2580_v34 }
  0x79   :  { %694 = vmatmul.mubr.bf16.vlgmr.msra.gmra.mrb[0].mxu0 %v2530_v1  ;;  %887 = vmatmul.mubr.bf16.vlgmr.msra.gmra.mrb[0].mxu1 %v2530_v1 }
  0x7a   :  { %703 = vmatprep.mubr.bf16.mxu0 %v2533_v2  ;;  %896 = vmatprep.mubr.bf16.mxu1 %v2533_v2 }
  0x7b   :  { %2381 = vmatpush3.bf16.msra.mxu0 %v2579_v33  ;;  %2403 = vmatpush3.bf16.msra.mxu1 %v2581_v35 }
  0x7c   :  { %2382 = vmatprep.subr.bf16.mxu0 %v2582_v36  ;;  %2404 = vmatprep.subr.bf16.mxu1 %v2584_v38 }
  0x7f   :  { %2383 = vmatpush3.bf16.msra.mxu0 %v2583_v37  ;;  %2405 = vmatpush3.bf16.msra.mxu1 %v2585_v39 }
  0x80   :  { %2384 = vmatprep.subr.bf16.mxu0 %v2586_v40  ;;  %2406 = vmatprep.subr.bf16.mxu1 %v2588_v42 }
  0x81   :  { %704 = vmatmul.mubr.bf16.gmra.mrb[4].mxu0 %v2535_v3  ;;  %897 = vmatmul.mubr.bf16.gmra.mrb[4].mxu1 %v2535_v3 }
  0x82   :  { %713 = vmatprep.mubr.bf16.mxu0 %v2536_v4  ;;  %906 = vmatprep.mubr.bf16.mxu1 %v2536_v4 }
  0x83   :  { %2385 = vmatpush3.bf16.msra.mxu0 %v2587_v41  ;;  %2407 = vmatpush3.bf16.msra.mxu1 %v2589_v43 }
  0x89   :  { %714 = vmatmul.mubr.bf16.gmra.mrb[8].mxu0 %v2538_v5  ;;  %907 = vmatmul.mubr.bf16.gmra.mrb[8].mxu1 %v2538_v5 }
  0x8a   :  { %723 = vmatprep.mubr.bf16.mxu0 %v2539_v6  ;;  %916 = vmatprep.mubr.bf16.mxu1 %v2539_v6 }
  0x91   :  { %724 = vmatmul.mubr.bf16.gmra.mrb[12].mxu0 %v2541_v7  ;;  %917 = vmatmul.mubr.bf16.gmra.mrb[12].mxu1 %v2541_v7 }
  0x92   :  { %733 = vmatprep.mubr.bf16.mxu0 %v2542_v8  ;;  %926 = vmatprep.mubr.bf16.mxu1 %v2542_v8 }
  0x99   :  { %734 = vmatmul.mubr.bf16.gmra.mrb[16].mxu0 %v2544_v9  ;;  %927 = vmatmul.mubr.bf16.gmra.mrb[16].mxu1 %v2544_v9  ;;  %v2590_v9 = vld [vmem:[#allocation7 + $0x58] sm:$0xff]  }
  0x9a   :  { %743 = vmatprep.mubr.bf16.mxu0 %v2545_v10  ;;  %936 = vmatprep.mubr.bf16.mxu1 %v2545_v10  ;;  %v2591_v10 = vld [vmem:[#allocation7 + $0x18] sm:$0xff]  }
  0x9b   :  { %2386 = vmatprep.subr.bf16.mxu0 %v2590_v9 }
  0x9c   :  { %2387 = vmatpush3.bf16.msra.mxu0 %v2591_v10 }
  0xa1   :  { %744 = vmatmul.mubr.bf16.gmra.mrb[20].mxu0 %v2547_v11  ;;  %937 = vmatmul.mubr.bf16.gmra.mrb[20].mxu1 %v2547_v11  ;;  %v2592_v11 = vld [vmem:[#allocation7 + $0xd8] sm:$0xff]  }
  0xa2   :  { %753 = vmatprep.mubr.bf16.mxu0 %v2548_v12  ;;  %946 = vmatprep.mubr.bf16.mxu1 %v2548_v12 }
  0xa3   :  { %2408 = vmatprep.subr.bf16.mxu1 %v2592_v11 }
  0xa9   :  { %754 = vmatmul.mubr.bf16.gmra.mrb[24].mxu0 %v2550_v13  ;;  %947 = vmatmul.mubr.bf16.gmra.mrb[24].mxu1 %v2550_v13 }
  0xaa   :  { %763 = vmatprep.mubr.bf16.mxu0 %v2551_v14  ;;  %956 = vmatprep.mubr.bf16.mxu1 %v2551_v14 }
  0xb1   :  { %764 = vmatmul.mubr.bf16.gmra.mrb[28].mxu0 %v2553_v15  ;;  %957 = vmatmul.mubr.bf16.gmra.mrb[28].mxu1 %v2553_v15  ;;  %v2593_v15 = vld [vmem:[#allocation7 + $0x98] sm:$0xff]  }
  0xb2   :  { %773 = vmatprep.mubr.bf16.mxu0 %v2554_v16  ;;  %966 = vmatprep.mubr.bf16.mxu1 %v2554_v16 }
  0xb3   :  { %2409 = vmatpush3.bf16.msra.mxu1 %v2593_v15 }
  0xb9   :  { %774 = vmatmul.mubr.bf16.gmra.mrb[32].mxu0 %v2556_v17  ;;  %967 = vmatmul.mubr.bf16.gmra.mrb[32].mxu1 %v2556_v17 }
  0xba   :  { %783 = vmatprep.mubr.bf16.mxu0 %v2557_v18  ;;  %976 = vmatprep.mubr.bf16.mxu1 %v2557_v18 }
  0xc1   :  { %784 = vmatmul.mubr.bf16.gmra.mrb[36].mxu0 %v2559_v19  ;;  %977 = vmatmul.mubr.bf16.gmra.mrb[36].mxu1 %v2559_v19 }
  0xc2   :  { %793 = vmatprep.mubr.bf16.mxu0 %v2560_v20  ;;  %986 = vmatprep.mubr.bf16.mxu1 %v2560_v20 }
  0xc9   :  { %794 = vmatmul.mubr.bf16.gmra.mrb[40].mxu0 %v2562_v21  ;;  %987 = vmatmul.mubr.bf16.gmra.mrb[40].mxu1 %v2562_v21 }
  0xca   :  { %803 = vmatprep.mubr.bf16.mxu0 %v2563_v22  ;;  %996 = vmatprep.mubr.bf16.mxu1 %v2563_v22 }
  0xd1   :  { %804 = vmatmul.mubr.bf16.gmra.mrb[44].mxu0 %v2565_v23  ;;  %997 = vmatmul.mubr.bf16.gmra.mrb[44].mxu1 %v2565_v23 }
  0xd2   :  { %813 = vmatprep.mubr.bf16.mxu0 %v2566_v24  ;;  %1006 = vmatprep.mubr.bf16.mxu1 %v2566_v24 }
  0xd9   :  { %814 = vmatmul.mubr.bf16.gmra.mrb[48].mxu0 %v2568_v25  ;;  %1007 = vmatmul.mubr.bf16.gmra.mrb[48].mxu1 %v2568_v25 }
  0xda   :  { %823 = vmatprep.mubr.bf16.mxu0 %v2569_v26  ;;  %1016 = vmatprep.mubr.bf16.mxu1 %v2569_v26 }
  0xe1   :  { %824 = vmatmul.mubr.bf16.gmra.mrb[52].mxu0 %v2571_v27  ;;  %1017 = vmatmul.mubr.bf16.gmra.mrb[52].mxu1 %v2571_v27 }
  0xe2   :  { %833 = vmatprep.mubr.bf16.mxu0 %v2572_v28  ;;  %1026 = vmatprep.mubr.bf16.mxu1 %v2572_v28 }
  0xe9   :  { %834 = vmatmul.mubr.bf16.gmra.mrb[56].mxu0 %v2574_v29  ;;  %1027 = vmatmul.mubr.bf16.gmra.mrb[56].mxu1 %v2574_v29 }
  0xea   :  { %843 = vmatprep.mubr.bf16.mxu0 %v2575_v30  ;;  %1036 = vmatprep.mubr.bf16.mxu1 %v2575_v30 }
  0xf1   :  { %844 = vmatmul.mubr.bf16.gmra.mrb[60].mxu0 %v2577_v31  ;;  %1037 = vmatmul.mubr.bf16.gmra.mrb[60].mxu1 %v2577_v31 }
 0x14c   :  { %v695_v55 = vpop.f32.mrb[0].mxu0  ;;  %v888_v56 = vpop.f32.mrb[0].mxu1 }
 0x14d   :  { %v696_v57 = vadd.f32 %v695_v55, %v2786_v51  ;;  %v889_v58 = vadd.f32 %v888_v56, %v2788_v52  ;;  %v697_v59 = vpop.f32.mrb[1].mxu0  ;;  %v890_v60 = vpop.f32.mrb[1].mxu1 }
 0x14e   :  { %v698_v61 = vadd.f32 %v697_v59, %v2790_v53  ;;  %v891_v62 = vadd.f32 %v890_v60, %v2792_v54  ;;  %v699_v63 = vpop.f32.mrb[2].mxu0  ;;  %v892_v0 = vpop.f32.mrb[2].mxu1 }
 0x14f   :  { %v1049_v1 = vmax.f32 %v889_v58, 0.0  ;;  %v700_v2 = vadd.f32 %v699_v63, %v2786_v51  ;;  %v893_v3 = vadd.f32 %v892_v0, %v2788_v52  ;;  %v701_v4 = vpop.f32.mrb[3].mxu0  ;;  %v894_v5 = vpop.f32.mrb[3].mxu1  ;;  %v1047_v12 = vmax.f32 %v696_v57, 0.0 }
 0x150   :  { %v1050_v6 = vmax.f32 %v891_v62, 0.0  ;;  %v702_v7 = vadd.f32 %v701_v4, %v2790_v53  ;;  %v895_v8 = vadd.f32 %v894_v5, %v2792_v54  ;;  %v1048_v16 = vmax.f32 %v698_v61, 0.0 }
 0x151   :  { %v1051_v13 = vmax.f32 %v700_v2, 0.0  ;;  %v1053_v14 = vmax.f32 %v893_v3, 0.0 }
 0x152   :  { %v1052_v17 = vmax.f32 %v702_v7, 0.0  ;;  %v1054_v18 = vmax.f32 %v895_v8, 0.0 }
 0x153   :  { %v1175_v19 = vadd.f32 %v1051_v13, %v1047_v12  ;;  %v1189_v20 = vadd.f32 %v1053_v14, %v1049_v1 }
 0x154   :  { %v1182_v21 = vadd.f32 %v1052_v17, %v1048_v16  ;;  %v1196_v22 = vadd.f32 %v1054_v18, %v1050_v6  ;;  %v705_v23 = vpop.f32.mrb[4].mxu0  ;;  %v898_v24 = vpop.f32.mrb[4].mxu1 }
 0x155   :  { %v1176_v25 = vrot.slane %v1175_v19, 4  ;;  %v1190_v26 = vrot.slane %v1189_v20, 4  ;;  %v706_v27 = vadd.f32 %v705_v23, %v2786_v51  ;;  %v899_v28 = vadd.f32 %v898_v24, %v2788_v52  ;;  %v707_v29 = vpop.f32.mrb[5].mxu0  ;;  %v900_v30 = vpop.f32.mrb[5].mxu1 }
 0x156   :  { %v1183_v31 = vrot.slane %v1182_v21, 4  ;;  %v1197_v32 = vrot.slane %v1196_v22, 4  ;;  %v708_v33 = vadd.f32 %v707_v29, %v2790_v53  ;;  %v901_v34 = vadd.f32 %v900_v30, %v2792_v54  ;;  %v709_v35 = vpop.f32.mrb[6].mxu0  ;;  %v902_v36 = vpop.f32.mrb[6].mxu1 }
 0x157   :  { %v1177_v37 = vadd.f32 %v1176_v25, %v1175_v19  ;;  %v1191_v38 = vadd.f32 %v1190_v26, %v1189_v20  ;;  %v1055_v39 = vmax.f32 %v706_v27, 0.0  ;;  %v1057_v40 = vmax.f32 %v899_v28, 0.0  ;;  %v711_v41 = vpop.f32.mrb[7].mxu0  ;;  %v904_v42 = vpop.f32.mrb[7].mxu1 }
 0x158   :  { %v1184_v43 = vadd.f32 %v1183_v31, %v1182_v21  ;;  %v1198_v44 = vadd.f32 %v1197_v32, %v1196_v22  ;;  %v1056_v45 = vmax.f32 %v708_v33, 0.0  ;;  %v1058_v46 = vmax.f32 %v901_v34, 0.0 }
 0x159   :  { %v1178_v47 = vrot.slane %v1177_v37, 2  ;;  %v1192_v48 = vrot.slane %v1191_v38, 2  ;;  %v710_v49 = vadd.f32 %v709_v35, %v2786_v51  ;;  %v903_v50 = vadd.f32 %v902_v36, %v2788_v52 }
 0x15a   :  { %v1185_v55 = vrot.slane %v1184_v43, 2  ;;  %v1199_v56 = vrot.slane %v1198_v44, 2  ;;  %v712_v57 = vadd.f32 %v711_v41, %v2790_v53  ;;  %v905_v58 = vadd.f32 %v904_v42, %v2792_v54 }
 0x15b   :  { %v1179_v59 = vadd.f32 %v1178_v47, %v1177_v37  ;;  %v1193_v60 = vadd.f32 %v1192_v48, %v1191_v38  ;;  %v1059_v61 = vmax.f32 %v710_v49, 0.0  ;;  %v1061_v62 = vmax.f32 %v903_v50, 0.0 }
 0x15c   :  { %v1186_v63 = vadd.f32 %v1185_v55, %v1184_v43  ;;  %v1200_v0 = vadd.f32 %v1199_v56, %v1198_v44  ;;  %v1060_v1 = vmax.f32 %v712_v57, 0.0  ;;  %v1062_v2 = vmax.f32 %v905_v58, 0.0  ;;  %v715_v3 = vpop.f32.mrb[8].mxu0  ;;  %v908_v4 = vpop.f32.mrb[8].mxu1 }
 0x15d   :  { %v1180_v5 = vrot.slane %v1179_v59, 1  ;;  %v1194_v6 = vrot.slane %v1193_v60, 1  ;;  %v1203_v7 = vadd.f32 %v1059_v61, %v1055_v39  ;;  %v1217_v8 = vadd.f32 %v1061_v62, %v1057_v40  ;;  %v717_v9 = vpop.f32.mrb[9].mxu0  ;;  %v910_v10 = vpop.f32.mrb[9].mxu1 }
 0x15e   :  { %v1187_v11 = vrot.slane %v1186_v63, 1  ;;  %v1201_v12 = vrot.slane %v1200_v0, 1  ;;  %v1210_v13 = vadd.f32 %v1060_v1, %v1056_v45  ;;  %v1224_v14 = vadd.f32 %v1062_v2, %v1058_v46  ;;  %v719_v15 = vpop.f32.mrb[10].mxu0  ;;  %v912_v16 = vpop.f32.mrb[10].mxu1 }
 0x15f   :  { %v1181_v17 = vadd.f32 %v1180_v5, %v1179_v59  ;;  %v1195_v18 = vadd.f32 %v1194_v6, %v1193_v60  ;;  %v1204_v19 = vrot.slane %v1203_v7, 4  ;;  %v1218_v20 = vrot.slane %v1217_v8, 4  ;;  %v721_v21 = vpop.f32.mrb[11].mxu0  ;;  %v914_v22 = vpop.f32.mrb[11].mxu1 }
 0x160   :  { %v1188_v23 = vadd.f32 %v1187_v11, %v1186_v63  ;;  %v1202_v24 = vadd.f32 %v1201_v12, %v1200_v0  ;;  %v1211_v25 = vrot.slane %v1210_v13, 4  ;;  %v1225_v26 = vrot.slane %v1224_v14, 4 }
 0x161   :  { %v1623_v27 = vpack.c.bf16 %v1181_v17, %v1181_v17  ;;  %v1625_v28 = vpack.c.bf16 %v1195_v18, %v1195_v18  ;;  %v1205_v29 = vadd.f32 %v1204_v19, %v1203_v7  ;;  %v1219_v30 = vadd.f32 %v1218_v20, %v1217_v8 }
 0x162   :  { %v1624_v31 = vpack.c.bf16 %v1188_v23, %v1188_v23  ;;  %v1626_v32 = vpack.c.bf16 %v1202_v24, %v1202_v24  ;;  %v1212_v33 = vadd.f32 %v1211_v25, %v1210_v13  ;;  %v1226_v34 = vadd.f32 %v1225_v26, %v1224_v14 }
 0x163   :  { %v2810_v35 = vunpack.c.l.b16 %v1623_v27  ;;  %v2812_v36 = vunpack.c.l.b16 %v1625_v28  ;;  %v1206_v37 = vrot.slane %v1205_v29, 2  ;;  %v1220_v38 = vrot.slane %v1219_v30, 2 }
 0x164   :  { %v2814_v39 = vunpack.c.l.b16 %v1624_v31  ;;  %v2816_v40 = vunpack.c.l.b16 %v1626_v32  ;;  %v1213_v41 = vrot.slane %v1212_v33, 2  ;;  %v1227_v42 = vrot.slane %v1226_v34, 2  ;;  %v2818_v43 = vpop.f32.mrb[12].mxu0  ;;  %v2820_v44 = vpop.f32.mrb[12].mxu1 }
 0x165   :  { %v1207_v45 = vadd.f32 %v1206_v37, %v1205_v29  ;;  %v1221_v46 = vadd.f32 %v1220_v38, %v1219_v30  ;;  %v716_v47 = vadd.f32 %v715_v3, %v2786_v51  ;;  %v909_v48 = vadd.f32 %v908_v4, %v2788_v52  ;;  %v2824_v49 = vpop.f32.mrb[13].mxu0  ;;  %v2826_v50 = vpop.f32.mrb[13].mxu1 }
 0x166   :  { %v1214_v55 = vadd.f32 %v1213_v41, %v1212_v33  ;;  %v1228_v56 = vadd.f32 %v1227_v42, %v1226_v34  ;;  %v718_v57 = vadd.f32 %v717_v9, %v2790_v53  ;;  %v911_v58 = vadd.f32 %v910_v10, %v2792_v54  ;;  %v2830_v59 = vpop.f32.mrb[14].mxu0  ;;  %v2832_v60 = vpop.f32.mrb[14].mxu1  ;;  %v2596_v33 = vld [vmem:[#allocation7 + $0xe0] sm:$0xff]  }
 0x167   :  { %v1208_v61 = vrot.slane %v1207_v45, 1  ;;  %v1222_v62 = vrot.slane %v1221_v46, 1  ;;  %v1063_v63 = vmax.f32 %v716_v47, 0.0  ;;  %v1065_v0 = vmax.f32 %v909_v48, 0.0  ;;  %v2834_v1 = vpop.f32.mrb[15].mxu0  ;;  %v2836_v2 = vpop.f32.mrb[15].mxu1  ;;  %2410 = vmatprep.subr.bf16.mxu1 %v2596_v33 }
 0x168   :  { %v1215_v3 = vrot.slane %v1214_v55, 1  ;;  %v1229_v4 = vrot.slane %v1228_v56, 1  ;;  %v1064_v5 = vmax.f32 %v718_v57, 0.0  ;;  %v1066_v6 = vmax.f32 %v911_v58, 0.0  ;;  %v2597_v34 = vld [vmem:[#allocation7 + $0xa0] sm:$0xff]  }
 0x169   :  { %v1209_v7 = vadd.f32 %v1208_v61, %v1207_v45  ;;  %v1223_v8 = vadd.f32 %v1222_v62, %v1221_v46  ;;  %v720_v9 = vadd.f32 %v719_v15, %v2786_v51  ;;  %v913_v10 = vadd.f32 %v912_v16, %v2788_v52  ;;  %v2594_v15 = vld [vmem:[#allocation7 + $0x60] sm:$0xff]   ;;  %2411 = vmatpush3.bf16.msra.mxu1 %v2597_v34 }
 0x16a   :  { %v1216_v11 = vadd.f32 %v1215_v3, %v1214_v55  ;;  %v1230_v12 = vadd.f32 %v1229_v4, %v1228_v56  ;;  %v722_v13 = vadd.f32 %v721_v21, %v2790_v53  ;;  %v915_v14 = vadd.f32 %v914_v22, %v2792_v54  ;;  %v2595_v16 = vld [vmem:[#allocation7 + $0x20] sm:$0xff]   ;;  %2388 = vmatprep.subr.bf16.mxu0 %v2594_v15 }
 0x16b   :  { %v1627_v17 = vpack.c.bf16 %v1209_v7, %v1209_v7  ;;  %v1629_v18 = vpack.c.bf16 %v1223_v8, %v1223_v8  ;;  %v1067_v19 = vmax.f32 %v720_v9, 0.0  ;;  %v1069_v20 = vmax.f32 %v913_v10, 0.0  ;;  %2389 = vmatpush3.bf16.msra.mxu0 %v2595_v16 }
 0x16c   :  { %v1628_v23 = vpack.c.bf16 %v1216_v11, %v1216_v11  ;;  %v1630_v24 = vpack.c.bf16 %v1230_v12, %v1230_v12  ;;  %v1068_v25 = vmax.f32 %v722_v13, 0.0  ;;  %v1070_v26 = vmax.f32 %v915_v14, 0.0  ;;  %v2842_v27 = vpop.f32.mrb[16].mxu0  ;;  %v2844_v28 = vpop.f32.mrb[16].mxu1 }
 0x16d   :  { %v1826_v29 = vunpack.c.l.b16 %v1627_v17  ;;  %v1828_v30 = vunpack.c.l.b16 %v1629_v18  ;;  %v1231_v31 = vadd.f32 %v1067_v19, %v1063_v63  ;;  %v1245_v21 = vadd.f32 %v1069_v20, %v1065_v0  ;;  %v2846_v32 = vpop.f32.mrb[17].mxu0  ;;  %v2848_v22 = vpop.f32.mrb[17].mxu1 }
 0x16e   :  { %v1827_v37 = vunpack.c.l.b16 %v1628_v23  ;;  %v1829_v38 = vunpack.c.l.b16 %v1630_v24  ;;  %v1238_v41 = vadd.f32 %v1068_v25, %v1064_v5  ;;  %v1252_v42 = vadd.f32 %v1070_v26, %v1066_v6  ;;  %v2850_v45 = vpop.f32.mrb[18].mxu0  ;;  %v2852_v46 = vpop.f32.mrb[18].mxu1 }
 0x16f   :  { %v2856_v47 = vsel %vm1886_vm0, %v1826_v29, %v2810_v35  ;;  %v2860_v48 = vsel %vm1886_vm0, %v1828_v30, %v2812_v36  ;;  %v1232_v55 = vrot.slane %v1231_v31, 4  ;;  %v1246_v56 = vrot.slane %v1245_v21, 4  ;;  %v2862_v57 = vpop.f32.mrb[19].mxu0  ;;  %v2864_v58 = vpop.f32.mrb[19].mxu1 }
 0x170   :  { %v2868_v61 = vsel %vm1886_vm0, %v1827_v37, %v2814_v39  ;;  %v2872_v35 = vsel %vm1886_vm0, %v1829_v38, %v2816_v40  ;;  %v1239_v62 = vrot.slane %v1238_v41, 4  ;;  %v1253_v63 = vrot.slane %v1252_v42, 4 }
 0x171   :  { %v1233_v36 = vadd.f32 %v1232_v55, %v1231_v31  ;;  %v1247_v0 = vadd.f32 %v1246_v56, %v1245_v21  ;;  %v726_v3 = vadd.f32 %v2818_v43, %v2786_v51  ;;  %v919_v4 = vadd.f32 %v2820_v44, %v2788_v52 }
 0x172   :  { %v1240_v5 = vadd.f32 %v1239_v62, %v1238_v41  ;;  %v1254_v6 = vadd.f32 %v1253_v63, %v1252_v42  ;;  %v728_v39 = vadd.f32 %v2824_v49, %v2790_v53  ;;  %v921_v40 = vadd.f32 %v2826_v50, %v2792_v54 }
 0x173   :  { %v1234_v7 = vrot.slane %v1233_v36, 2  ;;  %v1248_v8 = vrot.slane %v1247_v0, 2  ;;  %v1071_v9 = vmax.f32 %v726_v3, 0.0  ;;  %v1073_v10 = vmax.f32 %v919_v4, 0.0 }
 0x174   :  { %v1241_v11 = vrot.slane %v1240_v5, 2  ;;  %v1255_v12 = vrot.slane %v1254_v6, 2  ;;  %v1072_v13 = vmax.f32 %v728_v39, 0.0  ;;  %v1074_v43 = vmax.f32 %v921_v40, 0.0  ;;  %v2882_v14 = vpop.f32.mrb[20].mxu0  ;;  %v2884_v44 = vpop.f32.mrb[20].mxu1 }
 0x175   :  { %v1235_v17 = vadd.f32 %v1234_v7, %v1233_v36  ;;  %v1249_v18 = vadd.f32 %v1248_v8, %v1247_v0  ;;  %v730_v49 = vadd.f32 %v2830_v59, %v2786_v51  ;;  %v923_v50 = vadd.f32 %v2832_v60, %v2788_v52  ;;  %v2890_v19 = vpop.f32.mrb[21].mxu0  ;;  %v2892_v20 = vpop.f32.mrb[21].mxu1 }
 0x176   :  { %v1242_v23 = vadd.f32 %v1241_v11, %v1240_v5  ;;  %v1256_v24 = vadd.f32 %v1255_v12, %v1254_v6  ;;  %v732_v25 = vadd.f32 %v2834_v1, %v2790_v53  ;;  %v925_v26 = vadd.f32 %v2836_v2, %v2792_v54  ;;  %v2898_v15 = vpop.f32.mrb[22].mxu0  ;;  %v2900_v16 = vpop.f32.mrb[22].mxu1 }
 0x177   :  { %v1236_v59 = vrot.slane %v1235_v17, 1  ;;  %v1250_v29 = vrot.slane %v1249_v18, 1  ;;  %v1075_v30 = vmax.f32 %v730_v49, 0.0  ;;  %v1077_v60 = vmax.f32 %v923_v50, 0.0  ;;  %v2902_v31 = vpop.f32.mrb[23].mxu0  ;;  %v2904_v21 = vpop.f32.mrb[23].mxu1 }
 0x178   :  { %v1243_v33 = vrot.slane %v1242_v23, 1  ;;  %v1257_v34 = vrot.slane %v1256_v24, 1  ;;  %v1076_v37 = vmax.f32 %v732_v25, 0.0  ;;  %v1078_v38 = vmax.f32 %v925_v26, 0.0 }
 0x179   :  { %v1237_v1 = vadd.f32 %v1236_v59, %v1235_v17  ;;  %v1251_v41 = vadd.f32 %v1250_v29, %v1249_v18  ;;  %v1259_v42 = vadd.f32 %v1075_v30, %v1071_v9  ;;  %v1273_v2 = vadd.f32 %v1077_v60, %v1073_v10 }
 0x17a   :  { %v1244_v55 = vadd.f32 %v1243_v33, %v1242_v23  ;;  %v1258_v56 = vadd.f32 %v1257_v34, %v1256_v24  ;;  %v1266_v62 = vadd.f32 %v1076_v37, %v1072_v13  ;;  %v1280_v63 = vadd.f32 %v1078_v38, %v1074_v43 }
 0x17b   :  { %v1631_v36 = vpack.c.bf16 %v1237_v1, %v1237_v1  ;;  %v1633_v0 = vpack.c.bf16 %v1251_v41, %v1251_v41  ;;  %v1260_v3 = vrot.slane %v1259_v42, 4  ;;  %v1274_v4 = vrot.slane %v1273_v2, 4 }
 0x17c   :  { %v1632_v5 = vpack.c.bf16 %v1244_v55, %v1244_v55  ;;  %v1634_v6 = vpack.c.bf16 %v1258_v56, %v1258_v56  ;;  %v1267_v39 = vrot.slane %v1266_v62, 4  ;;  %v1281_v40 = vrot.slane %v1280_v63, 4  ;;  %v2906_v7 = vpop.f32.mrb[24].mxu0  ;;  %v2908_v8 = vpop.f32.mrb[24].mxu1 }
 0x17d   :  { %v1830_v11 = vunpack.c.l.b16 %v1631_v36  ;;  %v1832_v12 = vunpack.c.l.b16 %v1633_v0  ;;  %v1261_v9 = vadd.f32 %v1260_v3, %v1259_v42  ;;  %v1275_v10 = vadd.f32 %v1274_v4, %v1273_v2  ;;  %v2910_v17 = vpop.f32.mrb[25].mxu0  ;;  %v2912_v13 = vpop.f32.mrb[25].mxu1 }
 0x17e   :  { %v1831_v43 = vunpack.c.l.b16 %v1632_v5  ;;  %v1833_v18 = vunpack.c.l.b16 %v1634_v6  ;;  %v1268_v49 = vadd.f32 %v1267_v39, %v1266_v62  ;;  %v1282_v50 = vadd.f32 %v1281_v40, %v1280_v63  ;;  %v2914_v23 = vpop.f32.mrb[26].mxu0  ;;  %v2916_v24 = vpop.f32.mrb[26].mxu1 }
 0x17f   :  { %v2920_v25 = vsel %vm1888_vm1, %v1830_v11, %v2856_v47  ;;  %v2924_v26 = vsel %vm1888_vm1, %v1832_v12, %v2860_v48  ;;  %v1262_v59 = vrot.slane %v1261_v9, 2  ;;  %v1276_v29 = vrot.slane %v1275_v10, 2  ;;  %v2926_v30 = vpop.f32.mrb[27].mxu0  ;;  %v2928_v60 = vpop.f32.mrb[27].mxu1 }
 0x180   :  { %v2932_v33 = vsel %vm1888_vm1, %v1831_v43, %v2868_v61  ;;  %v2936_v34 = vsel %vm1888_vm1, %v1833_v18, %v2872_v35  ;;  %v1269_v47 = vrot.slane %v1268_v49, 2  ;;  %v1283_v37 = vrot.slane %v1282_v50, 2 }
 0x181   :  { %3470 = vst [vmem:[#allocation12_spill] sm:$0xff] %v2932_v33  ;;  %3471 = vst [vmem:[#allocation13_spill] sm:$0xff] %v2936_v34  ;;  %v1263_v38 = vadd.f32 %v1262_v59, %v1261_v9  ;;  %v1277_v48 = vadd.f32 %v1276_v29, %v1275_v10  ;;  %v736_v1 = vadd.f32 %v2842_v27, %v2786_v51 }
 0x182   :  { %v929_v41 = vadd.f32 %v2844_v28, %v2788_v52  ;;  %v1270_v42 = vadd.f32 %v1269_v47, %v1268_v49  ;;  %v1284_v2 = vadd.f32 %v1283_v37, %v1282_v50  ;;  %v738_v61 = vadd.f32 %v2846_v32, %v2790_v53  ;;  %v2598_v47 = vld [vmem:[#allocation7 + $0x68] sm:$0xff]  }
 0x183   :  { %v931_v35 = vadd.f32 %v2848_v22, %v2792_v54  ;;  %v1264_v55 = vrot.slane %v1263_v38, 1  ;;  %v1278_v56 = vrot.slane %v1277_v48, 1  ;;  %v1079_v62 = vmax.f32 %v736_v1, 0.0  ;;  %v2599_v37 = vld [vmem:[#allocation7 + $0x28] sm:$0xff]   ;;  %2390 = vmatprep.subr.bf16.mxu0 %v2598_v47 }
 0x184   :  { %v1081_v63 = vmax.f32 %v929_v41, 0.0  ;;  %v1271_v36 = vrot.slane %v1270_v42, 1  ;;  %v1285_v0 = vrot.slane %v1284_v2, 1  ;;  %v1080_v3 = vmax.f32 %v738_v61, 0.0  ;;  %v2946_v27 = vpop.f32.mrb[28].mxu0  ;;  %v2948_v5 = vpop.f32.mrb[28].mxu1  ;;  %2391 = vmatpush3.bf16.msra.mxu0 %v2599_v37 }
 0x185   :  { %v1082_v4 = vmax.f32 %v931_v35, 0.0  ;;  %v1265_v28 = vadd.f32 %v1264_v55, %v1263_v38  ;;  %v1279_v6 = vadd.f32 %v1278_v56, %v1277_v48  ;;  %v740_v32 = vadd.f32 %v2850_v45, %v2786_v51  ;;  %v2954_v39 = vpop.f32.mrb[29].mxu0  ;;  %v2956_v40 = vpop.f32.mrb[29].mxu1  ;;  %v2600_v41 = vld [vmem:[#allocation7 + $0xe8] sm:$0xff]  }
 0x186   :  { %v933_v22 = vadd.f32 %v2852_v46, %v2788_v52  ;;  %v1272_v11 = vadd.f32 %v1271_v36, %v1270_v42  ;;  %v1286_v12 = vadd.f32 %v1285_v0, %v1284_v2  ;;  %v742_v9 = vadd.f32 %v2862_v57, %v2790_v53  ;;  %v2962_v43 = vpop.f32.mrb[30].mxu0  ;;  %v2964_v18 = vpop.f32.mrb[30].mxu1  ;;  %2412 = vmatprep.subr.bf16.mxu1 %v2600_v41 }
 0x187   :  { %v935_v10 = vadd.f32 %v2864_v58, %v2792_v54  ;;  %v1635_v45 = vpack.c.bf16 %v1265_v28, %v1265_v28  ;;  %v1637_v49 = vpack.c.bf16 %v1279_v6, %v1279_v6  ;;  %v1083_v50 = vmax.f32 %v740_v32, 0.0  ;;  %v2966_v59 = vpop.f32.mrb[31].mxu0  ;;  %v2968_v29 = vpop.f32.mrb[31].mxu1  ;;  %v2601_v58 = vld [vmem:[#allocation7 + $0xa8] sm:$0xff]  }
 0x188   :  { %v1085_v46 = vmax.f32 %v933_v22, 0.0  ;;  %v1636_v38 = vpack.c.bf16 %v1272_v11, %v1272_v11  ;;  %v1638_v48 = vpack.c.bf16 %v1286_v12, %v1286_v12  ;;  %v1084_v57 = vmax.f32 %v742_v9, 0.0  ;;  %2413 = vmatpush3.bf16.msra.mxu1 %v2601_v58 }
 0x189   :  { %v1086_v1 = vmax.f32 %v935_v10, 0.0  ;;  %v1834_v42 = vunpack.c.l.b16 %v1635_v45  ;;  %v1836_v2 = vunpack.c.l.b16 %v1637_v49  ;;  %v1287_v61 = vadd.f32 %v1083_v50, %v1079_v62 }
 0x18a   :  { %v1301_v35 = vadd.f32 %v1085_v46, %v1081_v63  ;;  %v2970_v55 = vunpack.c.l.b16 %v1636_v38  ;;  %v2972_v56 = vunpack.c.l.b16 %v1638_v48  ;;  %v1294_v36 = vadd.f32 %v1084_v57, %v1080_v3 }
 0x18b   :  { %v1308_v0 = vadd.f32 %v1086_v1, %v1082_v4  ;;  %v2976_v28 = vsel %vm1890_vm2, %v1834_v42, %v2920_v25  ;;  %v2980_v6 = vsel %vm1890_vm2, %v1836_v2, %v2924_v26  ;;  %v1288_v32 = vrot.slane %v1287_v61, 4 }
 0x18c   :  { %3472 = vst [vmem:[#allocation14_spill] sm:$0xff] %v2970_v55  ;;  %3473 = vst [vmem:[#allocation15_spill] sm:$0xff] %v2972_v56  ;;  %v1302_v62 = vrot.slane %v1301_v35, 4  ;;  %v1295_v63 = vrot.slane %v1294_v36, 4  ;;  %v746_v11 = vadd.f32 %v2882_v14, %v2786_v51  ;;  %v939_v3 = vadd.f32 %v2884_v44, %v2788_v52  ;;  %v2986_v4 = vpop.f32.mrb[32].mxu0  ;;  %v2988_v12 = vpop.f32.mrb[32].mxu1 }
 0x18d   :  { %v1309_v22 = vrot.slane %v1308_v0, 4  ;;  %v1289_v25 = vadd.f32 %v1288_v32, %v1287_v61  ;;  %v748_v26 = vadd.f32 %v2890_v19, %v2790_v53  ;;  %v941_v10 = vadd.f32 %v2892_v20, %v2792_v54  ;;  %v2994_v45 = vpop.f32.mrb[33].mxu0  ;;  %v2996_v49 = vpop.f32.mrb[33].mxu1 }
 0x18e   :  { %v1303_v9 = vadd.f32 %v1302_v62, %v1301_v35  ;;  %v1296_v14 = vadd.f32 %v1295_v63, %v1294_v36  ;;  %v1087_v46 = vmax.f32 %v746_v11, 0.0  ;;  %v1089_v44 = vmax.f32 %v939_v3, 0.0  ;;  %v2998_v47 = vpop.f32.mrb[34].mxu0  ;;  %v3000_v37 = vpop.f32.mrb[34].mxu1 }
 0x18f   :  { %v1310_v50 = vadd.f32 %v1309_v22, %v1308_v0  ;;  %v1290_v38 = vrot.slane %v1289_v25, 2  ;;  %v1088_v57 = vmax.f32 %v748_v26, 0.0  ;;  %v1090_v1 = vmax.f32 %v941_v10, 0.0  ;;  %v3002_v19 = vpop.f32.mrb[35].mxu0  ;;  %v3004_v41 = vpop.f32.mrb[35].mxu1 }
 0x190   :  { %v1304_v48 = vrot.slane %v1303_v9, 2  ;;  %v1297_v20 = vrot.slane %v1296_v14, 2  ;;  %v750_v42 = vadd.f32 %v2898_v15, %v2786_v51  ;;  %v943_v2 = vadd.f32 %v2900_v16, %v2788_v52 }
 0x191   :  { %v1311_v58 = vrot.slane %v1310_v50, 2  ;;  %v1291_v61 = vadd.f32 %v1290_v38, %v1289_v25  ;;  %v752_v36 = vadd.f32 %v2902_v31, %v2790_v53  ;;  %v945_v0 = vadd.f32 %v2904_v21, %v2792_v54 }
 0x192   :  { %v1305_v35 = vadd.f32 %v1304_v48, %v1303_v9  ;;  %v1298_v32 = vadd.f32 %v1297_v20, %v1296_v14  ;;  %v1091_v63 = vmax.f32 %v750_v42, 0.0  ;;  %v1093_v22 = vmax.f32 %v943_v2, 0.0 }
 0x193   :  { %v1312_v62 = vadd.f32 %v1311_v58, %v1310_v50  ;;  %v1292_v11 = vrot.slane %v1291_v61, 1  ;;  %v1092_v26 = vmax.f32 %v752_v36, 0.0  ;;  %v1094_v10 = vmax.f32 %v945_v0, 0.0 }
 0x194   :  { %v1306_v3 = vrot.slane %v1305_v35, 1  ;;  %v1299_v15 = vrot.slane %v1298_v32, 1  ;;  %v1315_v34 = vadd.f32 %v1091_v63, %v1087_v46  ;;  %v1329_v16 = vadd.f32 %v1093_v22, %v1089_v44  ;;  %v3014_v25 = vpop.f32.mrb[36].mxu0  ;;  %v3016_v9 = vpop.f32.mrb[36].mxu1 }
 0x195   :  { %v1313_v56 = vrot.slane %v1312_v62, 1  ;;  %v1293_v31 = vadd.f32 %v1292_v11, %v1291_v61  ;;  %v1322_v48 = vadd.f32 %v1092_v26, %v1088_v57  ;;  %v1336_v21 = vadd.f32 %v1094_v10, %v1090_v1  ;;  %v3018_v14 = vpop.f32.mrb[37].mxu0  ;;  %v3020_v50 = vpop.f32.mrb[37].mxu1 }
 0x196   :  { %v1307_v38 = vadd.f32 %v1306_v3, %v1305_v35  ;;  %v1300_v20 = vadd.f32 %v1299_v15, %v1298_v32  ;;  %v1316_v42 = vrot.slane %v1315_v34, 4  ;;  %v1330_v2 = vrot.slane %v1329_v16, 4  ;;  %v3022_v36 = vpop.f32.mrb[38].mxu0  ;;  %v3024_v46 = vpop.f32.mrb[38].mxu1 }
 0x197   :  { %v1314_v58 = vadd.f32 %v1313_v56, %v1312_v62  ;;  %v1639_v44 = vpack.c.bf16 %v1293_v31, %v1293_v31  ;;  %v1323_v63 = vrot.slane %v1322_v48, 4  ;;  %v1337_v22 = vrot.slane %v1336_v21, 4  ;;  %v3026_v61 = vpop.f32.mrb[39].mxu0  ;;  %v3028_v57 = vpop.f32.mrb[39].mxu1 }
 0x198   :  { %v1641_v0 = vpack.c.bf16 %v1307_v38, %v1307_v38  ;;  %v1640_v1 = vpack.c.bf16 %v1300_v20, %v1300_v20  ;;  %v1317_v11 = vadd.f32 %v1316_v42, %v1315_v34  ;;  %v1331_v3 = vadd.f32 %v1330_v2, %v1329_v16 }
 0x199   :  { %v1642_v35 = vpack.c.bf16 %v1314_v58, %v1314_v58  ;;  %v1838_v32 = vunpack.c.l.b16 %v1639_v44  ;;  %v1324_v62 = vadd.f32 %v1323_v63, %v1322_v48  ;;  %v1338_v26 = vadd.f32 %v1337_v22, %v1336_v21 }
 0x19a   :  { %v1840_v56 = vunpack.c.l.b16 %v1641_v0  ;;  %v3030_v10 = vunpack.c.l.b16 %v1640_v1  ;;  %v1318_v31 = vrot.slane %v1317_v11, 2  ;;  %v1332_v38 = vrot.slane %v1331_v3, 2 }
 0x19b   :  { %v3032_v15 = vunpack.c.l.b16 %v1642_v35  ;;  %v3036_v55 = vsel %vm1892_vm3, %v1838_v32, %v2976_v28  ;;  %v1325_v34 = vrot.slane %v1324_v62, 2  ;;  %v1339_v16 = vrot.slane %v1338_v26, 2 }
 0x19c   :  { %3474 = vst [vmem:[#allocation16_spill] sm:$0xff] %v3030_v10  ;;  %v3040_v20 = vsel %vm1892_vm3, %v1840_v56, %v2980_v6  ;;  %v1319_v58 = vadd.f32 %v1318_v31, %v1317_v11  ;;  %v1333_v48 = vadd.f32 %v1332_v38, %v1331_v3  ;;  %v756_v21 = vadd.f32 %v2906_v7, %v2786_v51  ;;  %v3046_v2 = vpop.f32.mrb[40].mxu0  ;;  %v3048_v44 = vpop.f32.mrb[40].mxu1 }
 0x19d   :  { %3475 = vst [vmem:[#allocation17_spill] sm:$0xff] %v3032_v15  ;;  %v949_v42 = vadd.f32 %v2908_v8, %v2788_v52  ;;  %v1326_v28 = vadd.f32 %v1325_v34, %v1324_v62  ;;  %v1340_v0 = vadd.f32 %v1339_v16, %v1338_v26  ;;  %v758_v6 = vadd.f32 %v2910_v17, %v2790_v53  ;;  %v3054_v22 = vpop.f32.mrb[41].mxu0  ;;  %v3056_v1 = vpop.f32.mrb[41].mxu1 }
 0x19e   :  { %v951_v63 = vadd.f32 %v2912_v13, %v2792_v54  ;;  %3476 = vst [vmem:[#allocation18_spill] sm:$0xff] %v3056_v1  ;;  %v1320_v7 = vrot.slane %v1319_v58, 1  ;;  %v1334_v35 = vrot.slane %v1333_v48, 1  ;;  %v1095_v11 = vmax.f32 %v756_v21, 0.0  ;;  %v3058_v3 = vpop.f32.mrb[42].mxu0  ;;  %v3060_v32 = vpop.f32.mrb[42].mxu1 }
 0x19f   :  { %v1097_v8 = vmax.f32 %v949_v42, 0.0  ;;  %3477 = vst [vmem:[#allocation19_spill] sm:$0xff] %v3058_v3  ;;  %3478 = vst [vmem:[#allocation20_spill] sm:$0xff] %v3060_v32  ;;  %v1327_v56 = vrot.slane %v1326_v28, 1  ;;  %v1341_v62 = vrot.slane %v1340_v0, 1  ;;  %v1096_v26 = vmax.f32 %v758_v6, 0.0 }
 0x1a0   :  { %v1098_v31 = vmax.f32 %v951_v63, 0.0  ;;  %v3062_v17 = vpop.f32.mrb[43].mxu0  ;;  %v3064_v38 = vpop.f32.mrb[43].mxu1  ;;  %v1321_v13 = vadd.f32 %v1320_v7, %v1319_v58  ;;  %v1335_v34 = vadd.f32 %v1334_v35, %v1333_v48  ;;  %v760_v16 = vadd.f32 %v2914_v23, %v2786_v51  ;;  %v2602_v58 = vld [vmem:[#allocation7 + $0x70] sm:$0xff]  }
 0x1a1   :  { %3479 = vst [vmem:[#allocation21_spill] sm:$0xff] %v3062_v17  ;;  %3480 = vst [vmem:[#allocation22_spill] sm:$0xff] %v3064_v38  ;;  %v953_v21 = vadd.f32 %v2916_v24, %v2788_v52  ;;  %v1328_v42 = vadd.f32 %v1327_v56, %v1326_v28  ;;  %v1342_v15 = vadd.f32 %v1341_v62, %v1340_v0  ;;  %v2603_v48 = vld [vmem:[#allocation7 + $0x30] sm:$0xff]   ;;  %2392 = vmatprep.subr.bf16.mxu0 %v2602_v58 }
 0x1a2   :  { %v762_v10 = vadd.f32 %v2926_v30, %v2790_v53  ;;  %v955_v6 = vadd.f32 %v2928_v60, %v2792_v54  ;;  %v1643_v63 = vpack.c.bf16 %v1321_v13, %v1321_v13  ;;  %v1645_v33 = vpack.c.bf16 %v1335_v34, %v1335_v34  ;;  %v2604_v7 = vld [vmem:[#allocation7 + $0xf0] sm:$0xff]   ;;  %2393 = vmatpush3.bf16.msra.mxu0 %v2603_v48 }
 0x1a3   :  { %v1099_v17 = vmax.f32 %v760_v16, 0.0  ;;  %v1101_v38 = vmax.f32 %v953_v21, 0.0  ;;  %v1644_v35 = vpack.c.bf16 %v1328_v42, %v1328_v42  ;;  %v1646_v23 = vpack.c.bf16 %v1342_v15, %v1342_v15  ;;  %v2605_v24 = vld [vmem:[#allocation7 + $0xb0] sm:$0xff]   ;;  %2414 = vmatprep.subr.bf16.mxu1 %v2604_v7 }
 0x1a4   :  { %v1100_v32 = vmax.f32 %v762_v10, 0.0  ;;  %v1102_v3 = vmax.f32 %v955_v6, 0.0  ;;  %v1842_v28 = vunpack.c.l.b16 %v1643_v63  ;;  %v1844_v0 = vunpack.c.l.b16 %v1645_v33  ;;  %v3074_v30 = vpop.f32.mrb[44].mxu0  ;;  %v3076_v1 = vpop.f32.mrb[44].mxu1  ;;  %2415 = vmatpush3.bf16.msra.mxu1 %v2605_v24 }
 0x1a5   :  { %v1343_v56 = vadd.f32 %v1099_v17, %v1095_v11  ;;  %v1357_v62 = vadd.f32 %v1101_v38, %v1097_v8  ;;  %v3078_v60 = vunpack.c.l.b16 %v1644_v35  ;;  %v3080_v13 = vunpack.c.l.b16 %v1646_v23  ;;  %v3082_v15 = vpop.f32.mrb[45].mxu0  ;;  %v3084_v10 = vpop.f32.mrb[45].mxu1 }
 0x1a6   :  { %v1350_v34 = vadd.f32 %v1100_v32, %v1096_v26  ;;  %v1364_v16 = vadd.f32 %v1102_v3, %v1098_v31  ;;  %v3088_v33 = vsel %vm1894_vm4, %v1842_v28, %v3036_v55  ;;  %v3092_v11 = vsel %vm1894_vm4, %v1844_v0, %v3040_v20  ;;  %v3094_v38 = vpop.f32.mrb[46].mxu0  ;;  %v3096_v32 = vpop.f32.mrb[46].mxu1  ;;  %v2606_v0 = vld [vmem:[#allocation7 + $0x78] sm:$0xff]  }
 0x1a7   :  { %3481 = vst [vmem:[#allocation23_spill] sm:$0xff] %v3078_v60  ;;  %3482 = vst [vmem:[#allocation24_spill] sm:$0xff] %v3080_v13  ;;  %v1344_v8 = vrot.slane %v1343_v56, 4  ;;  %v1358_v17 = vrot.slane %v1357_v62, 4  ;;  %v766_v31 = vadd.f32 %v2946_v27, %v2786_v51  ;;  %v959_v21 = vadd.f32 %v2948_v5, %v2788_v52  ;;  %v3102_v55 = vpop.f32.mrb[47].mxu0  ;;  %v3104_v42 = vpop.f32.mrb[47].mxu1  ;;  %2394 = vmatprep.subr.bf16.mxu0 %v2606_v0 }
 0x1a8   :  { %3483 = vst [vmem:[#allocation25_spill] sm:$0xff] %v3096_v32  ;;  %v1351_v3 = vrot.slane %v1350_v34, 4  ;;  %v1365_v26 = vrot.slane %v1364_v16, 4  ;;  %3484 = vst [vmem:[#allocation26_spill] sm:$0xff] %v3102_v55  ;;  %v768_v63 = vadd.f32 %v2954_v39, %v2790_v53  ;;  %v961_v58 = vadd.f32 %v2956_v40, %v2792_v54  ;;  %v2607_v13 = vld [vmem:[#allocation7 + $0x38] sm:$0xff]  }
 0x1a9   :  { %3485 = vst [vmem:[#allocation27_spill] sm:$0xff] %v3104_v42  ;;  %v1345_v20 = vadd.f32 %v1344_v8, %v1343_v56  ;;  %v1359_v6 = vadd.f32 %v1358_v17, %v1357_v62  ;;  %v1103_v35 = vmax.f32 %v766_v31, 0.0  ;;  %v1105_v23 = vmax.f32 %v959_v21, 0.0  ;;  %v2608_v40 = vld [vmem:[#allocation7 + $0xf8] sm:$0xff]   ;;  %2395 = vmatpush3.bf16.msra.mxu0 %v2607_v13 }
 0x1aa   :  { %v1352_v48 = vadd.f32 %v1351_v3, %v1350_v34  ;;  %v1366_v7 = vadd.f32 %v1365_v26, %v1364_v16  ;;  %v1104_v28 = vmax.f32 %v768_v63, 0.0  ;;  %v1106_v5 = vmax.f32 %v961_v58, 0.0  ;;  %v2609_v34 = vld [vmem:[#allocation7 + $0xb8] sm:$0xff]   ;;  %2416 = vmatprep.subr.bf16.mxu1 %v2608_v40 }
 0x1ab   :  { %v1346_v27 = vrot.slane %v1345_v20, 2  ;;  %v1360_v24 = vrot.slane %v1359_v6, 2  ;;  %v770_v62 = vadd.f32 %v2962_v43, %v2786_v51  ;;  %v963_v39 = vadd.f32 %v2964_v18, %v2788_v52  ;;  %2417 = vmatpush3.bf16.msra.mxu1 %v2609_v34 }
 0x1ac   :  { %v1353_v60 = vrot.slane %v1352_v48, 2  ;;  %v1367_v56 = vrot.slane %v1366_v7, 2  ;;  %v772_v17 = vadd.f32 %v2966_v59, %v2790_v53  ;;  %v965_v3 = vadd.f32 %v2968_v29, %v2792_v54  ;;  %v3118_v26 = vpop.f32.mrb[48].mxu0  ;;  %v3120_v31 = vpop.f32.mrb[48].mxu1 }
 0x1ad   :  { %v1347_v16 = vadd.f32 %v1346_v27, %v1345_v20  ;;  %v1361_v8 = vadd.f32 %v1360_v24, %v1359_v6  ;;  %3486 = vst [vmem:[#allocation28_spill] sm:$0xff] %v3118_v26  ;;  %3487 = vst [vmem:[#allocation29_spill] sm:$0xff] %v3120_v31  ;;  %v1107_v63 = vmax.f32 %v770_v62, 0.0  ;;  %v1109_v58 = vmax.f32 %v963_v39, 0.0  ;;  %v3122_v18 = vpop.f32.mrb[49].mxu0  ;;  %v3124_v42 = vpop.f32.mrb[49].mxu1 }
 0x1ae   :  { %v1354_v21 = vadd.f32 %v1353_v60, %v1352_v48  ;;  %v1368_v43 = vadd.f32 %v1367_v56, %v1366_v7  ;;  %3488 = vst [vmem:[#allocation30_spill] sm:$0xff] %v3122_v18  ;;  %3489 = vst [vmem:[#allocation31_spill] sm:$0xff] %v3124_v42  ;;  %v1108_v6 = vmax.f32 %v772_v17, 0.0  ;;  %v1110_v27 = vmax.f32 %v965_v3, 0.0  ;;  %v3126_v29 = vpop.f32.mrb[50].mxu0  ;;  %v3128_v24 = vpop.f32.mrb[50].mxu1 }
 0x1af   :  { %v1348_v20 = vrot.slane %v1347_v16, 1  ;;  %v1362_v59 = vrot.slane %v1361_v8, 1  ;;  %3490 = vst [vmem:[#allocation32_spill] sm:$0xff] %v3126_v29  ;;  %3491 = vst [vmem:[#allocation33_spill] sm:$0xff] %v3128_v24  ;;  %v1371_v48 = vadd.f32 %v1107_v63, %v1103_v35  ;;  %v1385_v7 = vadd.f32 %v1109_v58, %v1105_v23  ;;  %v3130_v56 = vpop.f32.mrb[51].mxu0  ;;  %v3132_v62 = vpop.f32.mrb[51].mxu1 }
 0x1b0   :  { %v1355_v0 = vrot.slane %v1354_v21, 1  ;;  %v1369_v60 = vrot.slane %v1368_v43, 1  ;;  %3492 = vst [vmem:[#allocation34_spill] sm:$0xff] %v3130_v56  ;;  %3493 = vst [vmem:[#allocation35_spill] sm:$0xff] %v3132_v62  ;;  %v1378_v40 = vadd.f32 %v1108_v6, %v1104_v28  ;;  %v1392_v42 = vadd.f32 %v1110_v27, %v1106_v5 }
 0x1b1   :  { %v1349_v39 = vadd.f32 %v1348_v20, %v1347_v16  ;;  %v1363_v13 = vadd.f32 %v1362_v59, %v1361_v8  ;;  %v1372_v3 = vrot.slane %v1371_v48, 4  ;;  %v1386_v31 = vrot.slane %v1385_v7, 4 }
 0x1b2   :  { %v1356_v18 = vadd.f32 %v1355_v0, %v1354_v21  ;;  %v1370_v17 = vadd.f32 %v1369_v60, %v1368_v43  ;;  %v1379_v24 = vrot.slane %v1378_v40, 4  ;;  %v1393_v34 = vrot.slane %v1392_v42, 4 }
 0x1b3   :  { %v1647_v29 = vpack.c.bf16 %v1349_v39, %v1349_v39  ;;  %v1649_v26 = vpack.c.bf16 %v1363_v13, %v1363_v13  ;;  %v1373_v35 = vadd.f32 %v1372_v3, %v1371_v48  ;;  %v1387_v23 = vadd.f32 %v1386_v31, %v1385_v7 }
 0x1b4   :  { %v1648_v55 = vpack.c.bf16 %v1356_v18, %v1356_v18  ;;  %v1650_v32 = vpack.c.bf16 %v1370_v17, %v1370_v17  ;;  %v1380_v56 = vadd.f32 %v1379_v24, %v1378_v40  ;;  %v1394_v62 = vadd.f32 %v1393_v34, %v1392_v42  ;;  %v3134_v16 = vpop.f32.mrb[52].mxu0  ;;  %v3136_v28 = vpop.f32.mrb[52].mxu1 }
 0x1b5   :  { %v1846_v63 = vunpack.c.l.b16 %v1647_v29  ;;  %v1848_v58 = vunpack.c.l.b16 %v1649_v26  ;;  %v1374_v21 = vrot.slane %v1373_v35, 2  ;;  %v1388_v43 = vrot.slane %v1387_v23, 2  ;;  %v3142_v20 = vpop.f32.mrb[53].mxu0  ;;  %v3144_v18 = vpop.f32.mrb[53].mxu1 }
 0x1b6   :  { %v3138_v5 = vunpack.c.l.b16 %v1648_v55  ;;  %v3140_v8 = vunpack.c.l.b16 %v1650_v32  ;;  %v1381_v26 = vrot.slane %v1380_v56, 2  ;;  %v1395_v59 = vrot.slane %v1394_v62, 2  ;;  %v3154_v55 = vpop.f32.mrb[54].mxu0  ;;  %v3156_v32 = vpop.f32.mrb[54].mxu1 }
 0x1b7   :  { %v3148_v31 = vsel %vm1896_vm5, %v1846_v63, %v3088_v33  ;;  %v3152_v42 = vsel %vm1896_vm5, %v1848_v58, %v3092_v11  ;;  %v1375_v6 = vadd.f32 %v1374_v21, %v1373_v35  ;;  %v1389_v27 = vadd.f32 %v1388_v43, %v1387_v23  ;;  %v3162_v33 = vpop.f32.mrb[55].mxu0  ;;  %v3164_v0 = vpop.f32.mrb[55].mxu1 }
 0x1b8   :  { %3494 = vst [vmem:[#allocation36_spill] sm:$0xff] %v3138_v5  ;;  %3495 = vst [vmem:[#allocation37_spill] sm:$0xff] %v3140_v8  ;;  %v776_v29 = vadd.f32 %v2986_v4, %v2786_v51  ;;  %v969_v24 = vadd.f32 %v2988_v12, %v2788_v52  ;;  %v1382_v11 = vadd.f32 %v1381_v26, %v1380_v56 }
 0x1b9   :  { %3496 = vst [vmem:[#allocation38_spill] sm:$0xff] %v3148_v31  ;;  %3497 = vst [vmem:[#allocation39_spill] sm:$0xff] %v3152_v42  ;;  %v1396_v60 = vadd.f32 %v1395_v59, %v1394_v62  ;;  %v778_v48 = vadd.f32 %v2994_v45, %v2790_v53  ;;  %v971_v7 = vadd.f32 %v2996_v49, %v2792_v54  ;;  %v1376_v39 = vrot.slane %v1375_v6, 1 }
 0x1ba   :  { %v1390_v13 = vrot.slane %v1389_v27, 1  ;;  %v1111_v40 = vmax.f32 %v776_v29, 0.0  ;;  %v1113_v17 = vmax.f32 %v969_v24, 0.0  ;;  %v1383_v4 = vrot.slane %v1382_v11, 1 }
 0x1bb   :  { %v1397_v3 = vrot.slane %v1396_v60, 1  ;;  %v1112_v34 = vmax.f32 %v778_v48, 0.0  ;;  %v1114_v12 = vmax.f32 %v971_v7, 0.0  ;;  %v1377_v35 = vadd.f32 %v1376_v39, %v1375_v6 }
 0x1bc   :  { %v1391_v23 = vadd.f32 %v1390_v13, %v1389_v27  ;;  %v780_v56 = vadd.f32 %v2998_v47, %v2786_v51  ;;  %v973_v62 = vadd.f32 %v3000_v37, %v2788_v52  ;;  %v3174_v45 = vadd.f32 %v1383_v4, %v1382_v11  ;;  %v3182_v21 = vpop.f32.mrb[56].mxu0  ;;  %v3184_v43 = vpop.f32.mrb[56].mxu1 }
 0x1bd   :  { %v3176_v63 = vadd.f32 %v1397_v3, %v1396_v60  ;;  %v782_v49 = vadd.f32 %v3002_v19, %v2790_v53  ;;  %v975_v58 = vadd.f32 %v3004_v41, %v2792_v54  ;;  %v1651_v26 = vpack.c.bf16 %v1377_v35, %v1377_v35  ;;  %v3186_v27 = vpop.f32.mrb[57].mxu0  ;;  %v3188_v37 = vpop.f32.mrb[57].mxu1 }
 0x1be   :  { %3498 = vst [vmem:[#allocation40_spill] sm:$0xff] %v3174_v45  ;;  %v1653_v59 = vpack.c.bf16 %v1391_v23, %v1391_v23  ;;  %v1115_v47 = vmax.f32 %v780_v56, 0.0  ;;  %v1117_v6 = vmax.f32 %v973_v62, 0.0  ;;  %v3194_v11 = vpop.f32.mrb[58].mxu0  ;;  %v3196_v60 = vpop.f32.mrb[58].mxu1  ;;  %v786_v56 = vadd.f32 %v3014_v25, %v2786_v51 }
 0x1bf   :  { %3499 = vst [vmem:[#allocation41_spill] sm:$0xff] %v3176_v63  ;;  %v1116_v24 = vmax.f32 %v782_v49, 0.0  ;;  %v1118_v41 = vmax.f32 %v975_v58, 0.0  ;;  %v3198_v48 = vunpack.c.l.b16 %v1651_v26  ;;  %v3202_v4 = vpop.f32.mrb[59].mxu0  ;;  %v3204_v3 = vpop.f32.mrb[59].mxu1  ;;  %v979_v62 = vadd.f32 %v3016_v9, %v2788_v52 }
 0x1c0   :  { %v3200_v7 = vunpack.c.l.b16 %v1653_v59  ;;  %v1399_v39 = vadd.f32 %v1115_v47, %v1111_v40  ;;  %v1413_v13 = vadd.f32 %v1117_v6, %v1113_v17  ;;  %v788_v26 = vadd.f32 %v3018_v14, %v2790_v53 }
 0x1c1   :  { %3500 = vst [vmem:[#allocation42_spill] sm:$0xff] %v3198_v48  ;;  %v1406_v35 = vadd.f32 %v1116_v24, %v1112_v34  ;;  %v1420_v23 = vadd.f32 %v1118_v41, %v1114_v12  ;;  %v981_v40 = vadd.f32 %v3020_v50, %v2792_v54  ;;  %v1119_v47 = vmax.f32 %v786_v56, 0.0 }
 0x1c2   :  { %3501 = vst [vmem:[#allocation43_spill] sm:$0xff] %v3200_v7  ;;  %v1400_v49 = vrot.slane %v1399_v39, 4  ;;  %v1414_v58 = vrot.slane %v1413_v13, 4  ;;  %v1121_v6 = vmax.f32 %v979_v62, 0.0  ;;  %v1120_v24 = vmax.f32 %v788_v26, 0.0 }
 0x1c3   :  { %v1407_v17 = vrot.slane %v1406_v35, 4  ;;  %v1421_v59 = vrot.slane %v1420_v23, 4  ;;  %v1122_v41 = vmax.f32 %v981_v40, 0.0  ;;  %v790_v9 = vadd.f32 %v3022_v36, %v2786_v51 }
 0x1c4   :  { %v1401_v34 = vadd.f32 %v1400_v49, %v1399_v39  ;;  %v1415_v12 = vadd.f32 %v1414_v58, %v1413_v13  ;;  %v983_v29 = vadd.f32 %v3024_v46, %v2788_v52  ;;  %v3218_v14 = vpop.f32.mrb[60].mxu0  ;;  %v3220_v7 = vpop.f32.mrb[60].mxu1  ;;  %v792_v39 = vadd.f32 %v3026_v61, %v2790_v53 }
 0x1c5   :  { %v1408_v25 = vadd.f32 %v1407_v17, %v1406_v35  ;;  %v1422_v19 = vadd.f32 %v1421_v59, %v1420_v23  ;;  %v985_v13 = vadd.f32 %v3028_v57, %v2792_v54  ;;  %v3226_v35 = vpop.f32.mrb[61].mxu0  ;;  %v3228_v23 = vpop.f32.mrb[61].mxu1  ;;  %v1123_v62 = vmax.f32 %v790_v9, 0.0 }
 0x1c6   :  { %v1402_v50 = vrot.slane %v1401_v34, 2  ;;  %v1416_v42 = vrot.slane %v1415_v12, 2  ;;  %3502 = vst [vmem:[#allocation44_spill] sm:$0xff] %v3226_v35  ;;  %3503 = vst [vmem:[#allocation45_spill] sm:$0xff] %v3228_v23  ;;  %v1125_v46 = vmax.f32 %v983_v29, 0.0  ;;  %v3230_v49 = vpop.f32.mrb[62].mxu0 }
 0x1c7   :  { %v1409_v36 = vrot.slane %v1408_v25, 2  ;;  %v1423_v56 = vrot.slane %v1422_v19, 2  ;;  %3504 = vst [vmem:[#allocation46_spill] sm:$0xff] %v3230_v49  ;;  %v3232_v58 = vpop.f32.mrb[62].mxu1  ;;  %v1124_v17 = vmax.f32 %v792_v39, 0.0  ;;  %v1126_v59 = vmax.f32 %v985_v13, 0.0 }
 0x1c8   :  { %3505 = vst [vmem:[#allocation47_spill] sm:$0xff] %v3232_v58  ;;  %v1403_v26 = vadd.f32 %v1402_v50, %v1401_v34  ;;  %v1417_v40 = vadd.f32 %v1416_v42, %v1415_v12  ;;  %v3234_v61 = vpop.f32.mrb[63].mxu0  ;;  %v3236_v48 = vpop.f32.mrb[63].mxu1  ;;  %v1427_v8 = vadd.f32 %v1123_v62, %v1119_v47  ;;  %v1441_v63 = vadd.f32 %v1125_v46, %v1121_v6 }
 0x1c9   :  { %3506 = vst [vmem:[#allocation48_spill] sm:$0xff] %v3234_v61  ;;  %3507 = vst [vmem:[#allocation49_spill] sm:$0xff] %v3236_v48  ;;  %v1410_v57 = vadd.f32 %v1409_v36, %v1408_v25  ;;  %v1424_v31 = vadd.f32 %v1423_v56, %v1422_v19  ;;  %v1434_v9 = vadd.f32 %v1124_v17, %v1120_v24 }
 0x1ca   :  { %v1404_v5 = vrot.slane %v1403_v26, 1  ;;  %v1418_v45 = vrot.slane %v1417_v40, 1  ;;  %v1448_v29 = vadd.f32 %v1126_v59, %v1122_v41  ;;  %v1428_v35 = vrot.slane %v1427_v8, 4 }
 0x1cb   :  { %v1411_v23 = vrot.slane %v1410_v57, 1  ;;  %v1425_v49 = vrot.slane %v1424_v31, 1  ;;  %v1442_v58 = vrot.slane %v1441_v63, 4  ;;  %v1435_v12 = vrot.slane %v1434_v9, 4 }
 0x1cc   :  { %v1405_v34 = vadd.f32 %v1404_v5, %v1403_v26  ;;  %v1419_v42 = vadd.f32 %v1418_v45, %v1417_v40  ;;  %v1449_v50 = vrot.slane %v1448_v29, 4  ;;  %v1429_v61 = vadd.f32 %v1428_v35, %v1427_v8 }
 0x1cd   :  { %v1412_v39 = vadd.f32 %v1411_v23, %v1410_v57  ;;  %v1426_v13 = vadd.f32 %v1425_v49, %v1424_v31  ;;  %v1443_v48 = vadd.f32 %v1442_v58, %v1441_v63  ;;  %v1436_v47 = vadd.f32 %v1435_v12, %v1434_v9  ;;  %v3508_v57 = vld [vmem:[#allocation18_spill] sm:$0xff] }
 0x1ce   :  { %v1655_v25 = vpack.c.bf16 %v1405_v34, %v1405_v34  ;;  %v1657_v19 = vpack.c.bf16 %v1419_v42, %v1419_v42  ;;  %v1450_v6 = vadd.f32 %v1449_v50, %v1448_v29  ;;  %v1430_v24 = vrot.slane %v1429_v61, 2 }
 0x1cf   :  { %v1656_v36 = vpack.c.bf16 %v1412_v39, %v1412_v39  ;;  %v1658_v56 = vpack.c.bf16 %v1426_v13, %v1426_v13  ;;  %v1444_v41 = vrot.slane %v1443_v48, 2  ;;  %v1437_v17 = vrot.slane %v1436_v47, 2 }
 0x1d0   :  { %v1854_v62 = vunpack.c.l.b16 %v1655_v25  ;;  %v1856_v46 = vunpack.c.l.b16 %v1657_v19  ;;  %v1451_v59 = vrot.slane %v1450_v6, 2  ;;  %v1431_v26 = vadd.f32 %v1430_v24, %v1429_v61  ;;  %v3510_v19 = vld [vmem:[#allocation20_spill] sm:$0xff]  ;;  %v3512_v24 = vld [vmem:[#allocation22_spill] sm:$0xff] }
 0x1d1   :  { %v1855_v5 = vunpack.c.l.b16 %v1656_v36  ;;  %v1857_v45 = vunpack.c.l.b16 %v1658_v56  ;;  %v1445_v40 = vadd.f32 %v1444_v41, %v1443_v48  ;;  %v1438_v23 = vadd.f32 %v1437_v17, %v1436_v47  ;;  %v3511_v36 = vld [vmem:[#allocation21_spill] sm:$0xff] }
 0x1d2   :  { %v1452_v31 = vadd.f32 %v1451_v59, %v1450_v6  ;;  %v796_v8 = vadd.f32 %v3046_v2, %v2786_v51  ;;  %v989_v63 = vadd.f32 %v3048_v44, %v2788_v52  ;;  %v1432_v35 = vrot.slane %v1431_v26, 1  ;;  %v3509_v44 = vld [vmem:[#allocation19_spill] sm:$0xff] }
 0x1d3   :  { %v1446_v49 = vrot.slane %v1445_v40, 1  ;;  %v798_v58 = vadd.f32 %v3054_v22, %v2790_v53  ;;  %v991_v9 = vadd.f32 %v3508_v57, %v2792_v54  ;;  %v1439_v29 = vrot.slane %v1438_v23, 1 }
 0x1d4   :  { %v1453_v34 = vrot.slane %v1452_v31, 1  ;;  %v1127_v61 = vmax.f32 %v796_v8, 0.0  ;;  %v1129_v48 = vmax.f32 %v989_v63, 0.0  ;;  %v1433_v42 = vadd.f32 %v1432_v35, %v1431_v26 }
 0x1d5   :  { %v1447_v12 = vadd.f32 %v1446_v49, %v1445_v40  ;;  %v1128_v50 = vmax.f32 %v798_v58, 0.0  ;;  %v1130_v39 = vmax.f32 %v991_v9, 0.0  ;;  %v1440_v2 = vadd.f32 %v1439_v29, %v1438_v23 }
 0x1d6   :  { %v1454_v13 = vadd.f32 %v1453_v34, %v1452_v31  ;;  %v800_v25 = vadd.f32 %v3509_v44, %v2786_v51  ;;  %v993_v47 = vadd.f32 %v3510_v19, %v2788_v52  ;;  %v1659_v22 = vpack.c.bf16 %v1433_v42, %v1433_v42 }
 0x1d7   :  { %v1661_v6 = vpack.c.bf16 %v1447_v12, %v1447_v12  ;;  %v802_v56 = vadd.f32 %v3511_v36, %v2790_v53  ;;  %v995_v41 = vadd.f32 %v3512_v24, %v2792_v54  ;;  %v1660_v17 = vpack.c.bf16 %v1440_v2, %v1440_v2 }
 0x1d8   :  { %v1662_v59 = vpack.c.bf16 %v1454_v13, %v1454_v13  ;;  %v1131_v26 = vmax.f32 %v800_v25, 0.0  ;;  %v1133_v40 = vmax.f32 %v993_v47, 0.0  ;;  %v1858_v23 = vunpack.c.l.b16 %v1659_v22 }
 0x1d9   :  { %v1860_v31 = vunpack.c.l.b16 %v1661_v6  ;;  %v1132_v8 = vmax.f32 %v802_v56, 0.0  ;;  %v1134_v63 = vmax.f32 %v995_v41, 0.0  ;;  %v1859_v35 = vunpack.c.l.b16 %v1660_v17  ;;  %v3513_v17 = vld [vmem:[#allocation25_spill] sm:$0xff] }
 0x1da   :  { %v1861_v49 = vunpack.c.l.b16 %v1662_v59  ;;  %v1455_v58 = vadd.f32 %v1131_v26, %v1127_v61  ;;  %v1469_v57 = vadd.f32 %v1133_v40, %v1129_v48  ;;  %v3255_v9 = vsel %vm1886_vm0, %v1858_v23, %v1854_v62  ;;  %v3515_v23 = vld [vmem:[#allocation27_spill] sm:$0xff] }
 0x1db   :  { %v3258_v29 = vsel %vm1886_vm0, %v1860_v31, %v1856_v46  ;;  %v1462_v34 = vadd.f32 %v1132_v8, %v1128_v50  ;;  %v1476_v42 = vadd.f32 %v1134_v63, %v1130_v39  ;;  %v3261_v12 = vsel %vm1886_vm0, %v1859_v35, %v1855_v5 }
 0x1dc   :  { %v3264_v2 = vsel %vm1886_vm0, %v1861_v49, %v1857_v45  ;;  %v1456_v13 = vrot.slane %v1455_v58, 4  ;;  %v1470_v44 = vrot.slane %v1469_v57, 4  ;;  %v806_v61 = vadd.f32 %v3074_v30, %v2786_v51 }
 0x1dd   :  { %v1463_v25 = vrot.slane %v1462_v34, 4  ;;  %v1477_v19 = vrot.slane %v1476_v42, 4  ;;  %v999_v62 = vadd.f32 %v3076_v1, %v2788_v52  ;;  %v808_v50 = vadd.f32 %v3082_v15, %v2790_v53 }
 0x1de   :  { %v1457_v46 = vadd.f32 %v1456_v13, %v1455_v58  ;;  %v1471_v48 = vadd.f32 %v1470_v44, %v1469_v57  ;;  %v1001_v5 = vadd.f32 %v3084_v10, %v2792_v54  ;;  %v1135_v47 = vmax.f32 %v806_v61, 0.0  ;;  %v3514_v10 = vld [vmem:[#allocation26_spill] sm:$0xff] }
 0x1df   :  { %v1464_v45 = vadd.f32 %v1463_v25, %v1462_v34  ;;  %v1478_v39 = vadd.f32 %v1477_v19, %v1476_v42  ;;  %v1137_v22 = vmax.f32 %v999_v62, 0.0  ;;  %v1136_v56 = vmax.f32 %v808_v50, 0.0 }
 0x1e0   :  { %v1458_v6 = vrot.slane %v1457_v46, 2  ;;  %v1472_v36 = vrot.slane %v1471_v48, 2  ;;  %v1138_v24 = vmax.f32 %v1001_v5, 0.0  ;;  %v810_v1 = vadd.f32 %v3094_v38, %v2786_v51 }
 0x1e1   :  { %v1465_v30 = vrot.slane %v1464_v45, 2  ;;  %v1479_v41 = vrot.slane %v1478_v39, 2  ;;  %v1003_v59 = vadd.f32 %v3513_v17, %v2788_v52  ;;  %v812_v40 = vadd.f32 %v3514_v10, %v2790_v53 }
 0x1e2   :  { %v1459_v15 = vadd.f32 %v1458_v6, %v1457_v46  ;;  %v1473_v26 = vadd.f32 %v1472_v36, %v1471_v48  ;;  %v1005_v31 = vadd.f32 %v3515_v23, %v2792_v54  ;;  %v1139_v35 = vmax.f32 %v810_v1, 0.0 }
 0x1e3   :  { %v1466_v8 = vadd.f32 %v1465_v30, %v1464_v45  ;;  %v1480_v63 = vadd.f32 %v1479_v41, %v1478_v39  ;;  %v1141_v49 = vmax.f32 %v1003_v59, 0.0  ;;  %v1140_v34 = vmax.f32 %v812_v40, 0.0 }
 0x1e4   :  { %v1460_v58 = vrot.slane %v1459_v15, 1  ;;  %v1474_v57 = vrot.slane %v1473_v26, 1  ;;  %v1142_v42 = vmax.f32 %v1005_v31, 0.0  ;;  %v1483_v44 = vadd.f32 %v1139_v35, %v1135_v47 }
 0x1e5   :  { %v1467_v38 = vrot.slane %v1466_v8, 1  ;;  %v1481_v13 = vrot.slane %v1480_v63, 1  ;;  %v1497_v25 = vadd.f32 %v1141_v49, %v1137_v22  ;;  %v1490_v62 = vadd.f32 %v1140_v34, %v1136_v56 }
 0x1e6   :  { %v1461_v19 = vadd.f32 %v1460_v58, %v1459_v15  ;;  %v1475_v61 = vadd.f32 %v1474_v57, %v1473_v26  ;;  %v1504_v46 = vadd.f32 %v1142_v42, %v1138_v24  ;;  %v1484_v5 = vrot.slane %v1483_v44, 4 }
 0x1e7   :  { %v1468_v48 = vadd.f32 %v1467_v38, %v1466_v8  ;;  %v1482_v50 = vadd.f32 %v1481_v13, %v1480_v63  ;;  %v1498_v6 = vrot.slane %v1497_v25, 4  ;;  %v1491_v36 = vrot.slane %v1490_v62, 4  ;;  %v3516_v38 = vld [vmem:[#allocation28_spill] sm:$0xff]  ;;  %v3517_v13 = vld [vmem:[#allocation29_spill] sm:$0xff] }
 0x1e8   :  { %v1663_v45 = vpack.c.bf16 %v1461_v19, %v1461_v19  ;;  %v1665_v39 = vpack.c.bf16 %v1475_v61, %v1475_v61  ;;  %v1505_v30 = vrot.slane %v1504_v46, 4  ;;  %v1485_v17 = vadd.f32 %v1484_v5, %v1483_v44  ;;  %v3518_v19 = vld [vmem:[#allocation30_spill] sm:$0xff]  ;;  %v3519_v61 = vld [vmem:[#allocation31_spill] sm:$0xff] }
 0x1e9   :  { %v1664_v41 = vpack.c.bf16 %v1468_v48, %v1468_v48  ;;  %v1666_v1 = vpack.c.bf16 %v1482_v50, %v1482_v50  ;;  %v1499_v59 = vadd.f32 %v1498_v6, %v1497_v25  ;;  %v1492_v47 = vadd.f32 %v1491_v36, %v1490_v62 }
 0x1ea   :  { %v1862_v10 = vunpack.c.l.b16 %v1663_v45  ;;  %v1864_v40 = vunpack.c.l.b16 %v1665_v39  ;;  %v1506_v22 = vadd.f32 %v1505_v30, %v1504_v46  ;;  %v1486_v56 = vrot.slane %v1485_v17, 2 }
 0x1eb   :  { %v1863_v15 = vunpack.c.l.b16 %v1664_v41  ;;  %v1865_v26 = vunpack.c.l.b16 %v1666_v1  ;;  %v1500_v24 = vrot.slane %v1499_v59, 2  ;;  %v1493_v8 = vrot.slane %v1492_v47, 2  ;;  %v3520_v41 = vld [vmem:[#allocation32_spill] sm:$0xff] }
 0x1ec   :  { %v1922_v23 = vsel %vm1888_vm1, %v1862_v10, %v3255_v9  ;;  %v1936_v31 = vsel %vm1888_vm1, %v1864_v40, %v3258_v29  ;;  %v1507_v63 = vrot.slane %v1506_v22, 2  ;;  %v1487_v58 = vadd.f32 %v1486_v56, %v1485_v17  ;;  %v3521_v17 = vld [vmem:[#allocation33_spill] sm:$0xff] }
 0x1ed   :  { %v3288_v35 = vsel %vm1888_vm1, %v1863_v15, %v3261_v12  ;;  %v3292_v49 = vsel %vm1888_vm1, %v1865_v26, %v3264_v2  ;;  %v1501_v57 = vadd.f32 %v1500_v24, %v1499_v59  ;;  %v1494_v34 = vadd.f32 %v1493_v8, %v1492_v47  ;;  %v3522_v47 = vld [vmem:[#allocation34_spill] sm:$0xff]  ;;  %v3523_v15 = vld [vmem:[#allocation35_spill] sm:$0xff] }
 0x1ee   :  { %v1508_v42 = vadd.f32 %v1507_v63, %v1506_v22  ;;  %v816_v9 = vadd.f32 %v3516_v38, %v2786_v51  ;;  %v1009_v29 = vadd.f32 %v3517_v13, %v2788_v52  ;;  %v1488_v44 = vrot.slane %v1487_v58, 1 }
 0x1ef   :  { %v1502_v25 = vrot.slane %v1501_v57, 1  ;;  %v818_v12 = vadd.f32 %v3518_v19, %v2790_v53  ;;  %v1011_v62 = vadd.f32 %v3519_v61, %v2792_v54  ;;  %v1495_v2 = vrot.slane %v1494_v34, 1 }
 0x1f0   :  { %v1509_v46 = vrot.slane %v1508_v42, 1  ;;  %v1143_v48 = vmax.f32 %v816_v9, 0.0  ;;  %v1145_v50 = vmax.f32 %v1009_v29, 0.0  ;;  %v1489_v5 = vadd.f32 %v1488_v44, %v1487_v58 }
 0x1f1   :  { %v1503_v6 = vadd.f32 %v1502_v25, %v1501_v57  ;;  %v1144_v45 = vmax.f32 %v818_v12, 0.0  ;;  %v1146_v39 = vmax.f32 %v1011_v62, 0.0  ;;  %v1496_v36 = vadd.f32 %v1495_v2, %v1494_v34 }
 0x1f2   :  { %v1510_v30 = vadd.f32 %v1509_v46, %v1508_v42  ;;  %v820_v1 = vadd.f32 %v3520_v41, %v2786_v51  ;;  %v1013_v59 = vadd.f32 %v3521_v17, %v2788_v52  ;;  %v1667_v10 = vpack.c.bf16 %v1489_v5, %v1489_v5 }
 0x1f3   :  { %v1669_v40 = vpack.c.bf16 %v1503_v6, %v1503_v6  ;;  %v822_v22 = vadd.f32 %v3522_v47, %v2790_v53  ;;  %v1015_v26 = vadd.f32 %v3523_v15, %v2792_v54  ;;  %v1668_v56 = vpack.c.bf16 %v1496_v36, %v1496_v36 }
 0x1f4   :  { %v1670_v24 = vpack.c.bf16 %v1510_v30, %v1510_v30  ;;  %v1147_v8 = vmax.f32 %v820_v1, 0.0  ;;  %v1149_v63 = vmax.f32 %v1013_v59, 0.0  ;;  %v1866_v58 = vunpack.c.l.b16 %v1667_v10 }
 0x1f5   :  { %v1868_v57 = vunpack.c.l.b16 %v1669_v40  ;;  %v1148_v34 = vmax.f32 %v822_v22, 0.0  ;;  %v1150_v42 = vmax.f32 %v1015_v26, 0.0  ;;  %v3310_v38 = vunpack.c.l.b16 %v1668_v56 }
 0x1f6   :  { %v3312_v9 = vunpack.c.l.b16 %v1670_v24  ;;  %v1511_v13 = vadd.f32 %v1147_v8, %v1143_v48  ;;  %v1525_v29 = vadd.f32 %v1149_v63, %v1145_v50  ;;  %v3315_v44 = vsel %vm1890_vm2, %v1866_v58, %v1922_v23 }
 0x1f7   :  { %v3318_v25 = vsel %vm1890_vm2, %v1868_v57, %v1936_v31  ;;  %v1518_v19 = vadd.f32 %v1148_v34, %v1144_v45  ;;  %v1532_v12 = vadd.f32 %v1150_v42, %v1146_v39  ;;  %v826_v2 = vadd.f32 %v3134_v16, %v2786_v51 }
 0x1f8   :  { %v1512_v61 = vrot.slane %v1511_v13, 4  ;;  %v1526_v62 = vrot.slane %v1525_v29, 4  ;;  %v1019_v46 = vadd.f32 %v3136_v28, %v2788_v52  ;;  %v828_v48 = vadd.f32 %v3142_v20, %v2790_v53 }
 0x1f9   :  { %v1519_v5 = vrot.slane %v1518_v19, 4  ;;  %v1533_v6 = vrot.slane %v1532_v12, 4  ;;  %v1021_v23 = vadd.f32 %v3144_v18, %v2792_v54  ;;  %v1151_v45 = vmax.f32 %v826_v2, 0.0 }
 0x1fa   :  { %v1513_v31 = vadd.f32 %v1512_v61, %v1511_v13  ;;  %v1527_v50 = vadd.f32 %v1526_v62, %v1525_v29  ;;  %v1153_v39 = vmax.f32 %v1019_v46, 0.0  ;;  %v1152_v41 = vmax.f32 %v828_v48, 0.0 }
 0x1fb   :  { %v1520_v36 = vadd.f32 %v1519_v5, %v1518_v19  ;;  %v1534_v30 = vadd.f32 %v1533_v6, %v1532_v12  ;;  %v1154_v1 = vmax.f32 %v1021_v23, 0.0  ;;  %v830_v28 = vadd.f32 %v3154_v55, %v2786_v51 }
 0x1fc   :  { %v1514_v16 = vrot.slane %v1513_v31, 2  ;;  %v1528_v17 = vrot.slane %v1527_v50, 2  ;;  %v1023_v59 = vadd.f32 %v3156_v32, %v2788_v52  ;;  %v832_v18 = vadd.f32 %v3162_v33, %v2790_v53 }
 0x1fd   :  { %v1521_v20 = vrot.slane %v1520_v36, 2  ;;  %v1535_v10 = vrot.slane %v1534_v30, 2  ;;  %v1025_v40 = vadd.f32 %v3164_v0, %v2792_v54  ;;  %v1155_v15 = vmax.f32 %v830_v28, 0.0 }
 0x1fe   :  { %v1515_v47 = vadd.f32 %v1514_v16, %v1513_v31  ;;  %v1529_v22 = vadd.f32 %v1528_v17, %v1527_v50  ;;  %v1157_v26 = vmax.f32 %v1023_v59, 0.0  ;;  %v1156_v8 = vmax.f32 %v832_v18, 0.0 }
 0x1ff   :  { %v1522_v56 = vadd.f32 %v1521_v20, %v1520_v36  ;;  %v1536_v24 = vadd.f32 %v1535_v10, %v1534_v30  ;;  %v1158_v63 = vmax.f32 %v1025_v40, 0.0  ;;  %v1539_v57 = vadd.f32 %v1155_v15, %v1151_v45 }
 0x200   :  { %v1516_v55 = vrot.slane %v1515_v47, 1  ;;  %v1530_v58 = vrot.slane %v1529_v22, 1  ;;  %v1553_v32 = vadd.f32 %v1157_v26, %v1153_v39  ;;  %v1546_v13 = vadd.f32 %v1156_v8, %v1152_v41 }
 0x201   :  { %v1523_v34 = vrot.slane %v1522_v56, 1  ;;  %v1537_v42 = vrot.slane %v1536_v24, 1  ;;  %v1560_v29 = vadd.f32 %v1158_v63, %v1154_v1  ;;  %v1540_v12 = vrot.slane %v1539_v57, 4 }
 0x202   :  { %v1517_v33 = vadd.f32 %v1516_v55, %v1515_v47  ;;  %v1531_v19 = vadd.f32 %v1530_v58, %v1529_v22  ;;  %v1554_v0 = vrot.slane %v1553_v32, 4  ;;  %v1547_v2 = vrot.slane %v1546_v13, 4 }
 0x203   :  { %v1524_v61 = vadd.f32 %v1523_v34, %v1522_v56  ;;  %v1538_v62 = vadd.f32 %v1537_v42, %v1536_v24  ;;  %v1561_v46 = vrot.slane %v1560_v29, 4  ;;  %v1541_v48 = vadd.f32 %v1540_v12, %v1539_v57 }
 0x204   :  { %v1671_v5 = vpack.c.bf16 %v1517_v33, %v1517_v33  ;;  %v1673_v6 = vpack.c.bf16 %v1531_v19, %v1531_v19  ;;  %v1555_v23 = vadd.f32 %v1554_v0, %v1553_v32  ;;  %v1548_v45 = vadd.f32 %v1547_v2, %v1546_v13 }
 0x205   :  { %v1672_v31 = vpack.c.bf16 %v1524_v61, %v1524_v61  ;;  %v1674_v50 = vpack.c.bf16 %v1538_v62, %v1538_v62  ;;  %v1562_v39 = vadd.f32 %v1561_v46, %v1560_v29  ;;  %v1542_v41 = vrot.slane %v1541_v48, 2 }
 0x206   :  { %v1870_v36 = vunpack.c.l.b16 %v1671_v5  ;;  %v1872_v30 = vunpack.c.l.b16 %v1673_v6  ;;  %v1556_v1 = vrot.slane %v1555_v23, 2  ;;  %v1549_v28 = vrot.slane %v1548_v45, 2 }
 0x207   :  { %v3336_v16 = vunpack.c.l.b16 %v1672_v31  ;;  %v3338_v17 = vunpack.c.l.b16 %v1674_v50  ;;  %v1563_v59 = vrot.slane %v1562_v39, 2  ;;  %v1543_v18 = vadd.f32 %v1542_v41, %v1541_v48 }
 0x208   :  { %v1924_v20 = vsel %vm1892_vm3, %v1870_v36, %v3315_v44  ;;  %v1938_v10 = vsel %vm1892_vm3, %v1872_v30, %v3318_v25  ;;  %v1557_v40 = vadd.f32 %v1556_v1, %v1555_v23  ;;  %v1550_v47 = vadd.f32 %v1549_v28, %v1548_v45  ;;  %v3524_v28 = vld [vmem:[#allocation44_spill] sm:$0xff] }
 0x209   :  { %v1564_v22 = vadd.f32 %v1563_v59, %v1562_v39  ;;  %v836_v15 = vadd.f32 %v3182_v21, %v2786_v51  ;;  %v1029_v26 = vadd.f32 %v3184_v43, %v2788_v52  ;;  %v1544_v56 = vrot.slane %v1543_v18, 1 }
 0x20a   :  { %v1558_v24 = vrot.slane %v1557_v40, 1  ;;  %v838_v8 = vadd.f32 %v3186_v27, %v2790_v53  ;;  %v1031_v44 = vadd.f32 %v3188_v37, %v2792_v54  ;;  %v1551_v63 = vrot.slane %v1550_v47, 1 }
 0x20b   :  { %v1565_v25 = vrot.slane %v1564_v22, 1  ;;  %v1159_v55 = vmax.f32 %v836_v15, 0.0  ;;  %v1161_v58 = vmax.f32 %v1029_v26, 0.0  ;;  %v1545_v57 = vadd.f32 %v1544_v56, %v1543_v18 }
 0x20c   :  { %v1559_v32 = vadd.f32 %v1558_v24, %v1557_v40  ;;  %v1160_v34 = vmax.f32 %v838_v8, 0.0  ;;  %v1162_v42 = vmax.f32 %v1031_v44, 0.0  ;;  %v1552_v21 = vadd.f32 %v1551_v63, %v1550_v47  ;;  %v3527_v63 = vld [vmem:[#allocation47_spill] sm:$0xff] }
 0x20d   :  { %v1566_v13 = vadd.f32 %v1565_v25, %v1564_v22  ;;  %v840_v43 = vadd.f32 %v3194_v11, %v2786_v51  ;;  %v1033_v29 = vadd.f32 %v3196_v60, %v2788_v52  ;;  %v1675_v27 = vpack.c.bf16 %v1545_v57, %v1545_v57  ;;  %v3528_v57 = vld [vmem:[#allocation48_spill] sm:$0xff] }
 0x20e   :  { %v1677_v33 = vpack.c.bf16 %v1559_v32, %v1559_v32  ;;  %v842_v37 = vadd.f32 %v3202_v4, %v2790_v53  ;;  %v1035_v19 = vadd.f32 %v3204_v3, %v2792_v54  ;;  %v1676_v12 = vpack.c.bf16 %v1552_v21, %v1552_v21 }
 0x20f   :  { %v1678_v0 = vpack.c.bf16 %v1566_v13, %v1566_v13  ;;  %v1163_v61 = vmax.f32 %v840_v43, 0.0  ;;  %v1165_v62 = vmax.f32 %v1033_v29, 0.0  ;;  %v1874_v2 = vunpack.c.l.b16 %v1675_v27 }
 0x210   :  { %v1876_v46 = vunpack.c.l.b16 %v1677_v33  ;;  %v1164_v5 = vmax.f32 %v842_v37, 0.0  ;;  %v1166_v6 = vmax.f32 %v1035_v19, 0.0  ;;  %v3360_v11 = vunpack.c.l.b16 %v1676_v12 }
 0x211   :  { %v3362_v48 = vunpack.c.l.b16 %v1678_v0  ;;  %v1567_v60 = vadd.f32 %v1163_v61, %v1159_v55  ;;  %v1581_v23 = vadd.f32 %v1165_v62, %v1161_v58  ;;  %v3365_v31 = vsel %vm1894_vm4, %v1874_v2, %v1924_v20  ;;  %v3525_v20 = vld [vmem:[#allocation45_spill] sm:$0xff] }
 0x212   :  { %v3368_v4 = vsel %vm1894_vm4, %v1876_v46, %v1938_v10  ;;  %v1574_v3 = vadd.f32 %v1164_v5, %v1160_v34  ;;  %v1588_v50 = vadd.f32 %v1166_v6, %v1162_v42  ;;  %v846_v36 = vadd.f32 %v3218_v14, %v2786_v51  ;;  %v3529_v34 = vld [vmem:[#allocation49_spill] sm:$0xff] }
 0x213   :  { %v1568_v45 = vrot.slane %v1567_v60, 4  ;;  %v1582_v39 = vrot.slane %v1581_v23, 4  ;;  %v1039_v30 = vadd.f32 %v3220_v7, %v2788_v52  ;;  %v848_v59 = vadd.f32 %v3524_v28, %v2790_v53  ;;  %v3526_v7 = vld [vmem:[#allocation46_spill] sm:$0xff] }
 0x214   :  { %v1575_v41 = vrot.slane %v1574_v3, 4  ;;  %v1589_v1 = vrot.slane %v1588_v50, 4  ;;  %v1041_v18 = vadd.f32 %v3525_v20, %v2792_v54  ;;  %v1167_v47 = vmax.f32 %v846_v36, 0.0 }
 0x215   :  { %v1569_v10 = vadd.f32 %v1568_v45, %v1567_v60  ;;  %v1583_v40 = vadd.f32 %v1582_v39, %v1581_v23  ;;  %v1169_v22 = vmax.f32 %v1039_v30, 0.0  ;;  %v1168_v56 = vmax.f32 %v848_v59, 0.0 }
 0x216   :  { %v1576_v15 = vadd.f32 %v1575_v41, %v1574_v3  ;;  %v1590_v26 = vadd.f32 %v1589_v1, %v1588_v50  ;;  %v1170_v24 = vmax.f32 %v1041_v18, 0.0  ;;  %v850_v44 = vadd.f32 %v3526_v7, %v2786_v51 }
 0x217   :  { %v1570_v14 = vrot.slane %v1569_v10, 2  ;;  %v1584_v8 = vrot.slane %v1583_v40, 2  ;;  %v1043_v25 = vadd.f32 %v3527_v63, %v2788_v52  ;;  %v852_v32 = vadd.f32 %v3528_v57, %v2790_v53  ;;  %v3530_v63 = vld [vmem:[#allocation40_spill] sm:$0xff] }
 0x218   :  { %v1577_v55 = vrot.slane %v1576_v15, 2  ;;  %v1591_v58 = vrot.slane %v1590_v26, 2  ;;  %v1045_v42 = vadd.f32 %v3529_v34, %v2792_v54  ;;  %v1171_v43 = vmax.f32 %v850_v44, 0.0  ;;  %v3533_v34 = vld [vmem:[#allocation14_spill] sm:$0xff] }
 0x219   :  { %v1571_v21 = vadd.f32 %v1570_v14, %v1569_v10  ;;  %v1585_v13 = vadd.f32 %v1584_v8, %v1583_v40  ;;  %v1173_v29 = vmax.f32 %v1043_v25, 0.0  ;;  %v1172_v37 = vmax.f32 %v852_v32, 0.0  ;;  %v3532_v32 = vld [vmem:[#allocation12_spill] sm:$0xff] }
 0x21a   :  { %v1578_v27 = vadd.f32 %v1577_v55, %v1576_v15  ;;  %v1592_v33 = vadd.f32 %v1591_v58, %v1590_v26  ;;  %v1174_v19 = vmax.f32 %v1045_v42, 0.0  ;;  %v1595_v0 = vadd.f32 %v1171_v43, %v1167_v47 }
 0x21b   :  { %v1572_v51 = vrot.slane %v1571_v21, 1  ;;  %v1586_v12 = vrot.slane %v1585_v13, 1  ;;  %v1609_v52 = vadd.f32 %v1173_v29, %v1169_v22  ;;  %v1602_v2 = vadd.f32 %v1172_v37, %v1168_v56  ;;  %v3535_v37 = vld [vmem:[#allocation23_spill] sm:$0xff] }
 0x21c   :  { %v1579_v61 = vrot.slane %v1578_v27, 1  ;;  %v1593_v62 = vrot.slane %v1592_v33, 1  ;;  %v1616_v46 = vadd.f32 %v1174_v19, %v1170_v24  ;;  %v1596_v6 = vrot.slane %v1595_v0, 4 }
 0x21d   :  { %v1573_v53 = vadd.f32 %v1572_v51, %v1571_v21  ;;  %v1587_v5 = vadd.f32 %v1586_v12, %v1585_v13  ;;  %v1610_v54 = vrot.slane %v1609_v52, 4  ;;  %v1603_v3 = vrot.slane %v1602_v2, 4  ;;  %v3534_v13 = vld [vmem:[#allocation16_spill] sm:$0xff] }
 0x21e   :  { %v1580_v60 = vadd.f32 %v1579_v61, %v1578_v27  ;;  %v1594_v23 = vadd.f32 %v1593_v62, %v1592_v33  ;;  %v1617_v50 = vrot.slane %v1616_v46, 4  ;;  %v1597_v36 = vadd.f32 %v1596_v6, %v1595_v0 }
 0x21f   :  { %v1679_v45 = vpack.c.bf16 %v1573_v53, %v1573_v53  ;;  %v1681_v39 = vpack.c.bf16 %v1587_v5, %v1587_v5  ;;  %v1611_v30 = vadd.f32 %v1610_v54, %v1609_v52  ;;  %v1604_v28 = vadd.f32 %v1603_v3, %v1602_v2  ;;  %v3536_v52 = vld [vmem:[#allocation36_spill] sm:$0xff]  ;;  %v3539_v54 = vld [vmem:[#allocation13_spill] sm:$0xff] }
 0x220   :  { %v1680_v41 = vpack.c.bf16 %v1580_v60, %v1580_v60  ;;  %v1682_v1 = vpack.c.bf16 %v1594_v23, %v1594_v23  ;;  %v1618_v59 = vadd.f32 %v1617_v50, %v1616_v46  ;;  %v1598_v10 = vrot.slane %v1597_v36, 2  ;;  %v3540_v60 = vld [vmem:[#allocation15_spill] sm:$0xff] }
 0x221   :  { %v1878_v20 = vunpack.c.l.b16 %v1679_v45  ;;  %v1880_v18 = vunpack.c.l.b16 %v1681_v39  ;;  %v1612_v40 = vrot.slane %v1611_v30, 2  ;;  %v1605_v15 = vrot.slane %v1604_v28, 2  ;;  %v3541_v45 = vld [vmem:[#allocation17_spill] sm:$0xff] }
 0x222   :  { %v1879_v47 = vunpack.c.l.b16 %v1680_v41  ;;  %v1881_v22 = vunpack.c.l.b16 %v1682_v1  ;;  %v1619_v26 = vrot.slane %v1618_v59, 2  ;;  %v1599_v14 = vadd.f32 %v1598_v10, %v1597_v36  ;;  %v3542_v1 = vld [vmem:[#allocation24_spill] sm:$0xff]  ;;  %v3545_v10 = vld [vmem:[#allocation42_spill] sm:$0xff] }
 0x223   :  { %v1926_v56 = vsel %vm1896_vm5, %v1878_v20, %v3365_v31  ;;  %v1940_v24 = vsel %vm1896_vm5, %v1880_v18, %v3368_v4  ;;  %v1613_v8 = vadd.f32 %v1612_v40, %v1611_v30  ;;  %v1606_v7 = vadd.f32 %v1605_v15, %v1604_v28  ;;  %v3543_v20 = vld [vmem:[#allocation37_spill] sm:$0xff] }
 0x224   :  { %v1620_v44 = vadd.f32 %v1619_v26, %v1618_v59  ;;  %v3531_v25 = vpack.c.bf16 %v3530_v63, %v3530_v63  ;;  %v1600_v58 = vrot.slane %v1599_v14, 1  ;;  %v1902_v42 = vsel %vm1890_vm2, %v3533_v34, %v3532_v32 }
 0x225   :  { %v1614_v57 = vrot.slane %v1613_v8, 1  ;;  %v1930_v31 = vsel %vm1890_vm2, %v3310_v38, %v3288_v35  ;;  %v1607_v4 = vrot.slane %v1606_v7, 1  ;;  %v1903_v43 = vsel %vm1892_vm3, %v3534_v13, %v1902_v42 }
 0x226   :  { %v1851_v55 = vunpack.c.l.b16 %v3531_v25  ;;  %v1621_v21 = vrot.slane %v1620_v44, 1  ;;  %v1931_v29 = vsel %vm1892_vm3, %v3336_v16, %v1930_v31  ;;  %v1601_v27 = vadd.f32 %v1600_v58, %v1599_v14  ;;  %v3537_v16 = vld [vmem:[#allocation41_spill] sm:$0xff]  ;;  %v2347_v58 = vld [vmem:[%s3464_s4] ss:$0 sm:$0xff]  ;;  %s2676_s4 = scalar_lea.vmem %s2239_s11, 256 }
 0x227   :  { %v1615_v33 = vadd.f32 %v1614_v57, %v1613_v8  ;;  %v1904_v19 = vsel %vm1894_vm4, %v3535_v37, %v1903_v43  ;;  %v1932_v51 = vsel %vm1894_vm4, %v3360_v11, %v1931_v29  ;;  %v1608_v12 = vadd.f32 %v1607_v4, %v1606_v7  ;;  %v3546_v7 = vld [vmem:[#allocation39_spill] sm:$0xff]  ;;  %p2677_p10 = scmp.ne.s32.totalorder %s2239_s11, %s2676_s4  ;;  %p2682_p12 = scmp.lt.s32.totalorder %s2676_s4, %s2676_s4 }
 0x228   :  { %v1622_v0 = vadd.f32 %v1621_v21, %v1620_v44  ;;  %v1905_v35 = vsel %vm1896_vm5, %v3536_v52, %v1904_v19  ;;  %v1933_v38 = vsel %vm1896_vm5, %v1879_v47, %v1932_v51  ;;  %v1683_v61 = vpack.c.bf16 %v1601_v27, %v1601_v27  ;;  %v3547_v44 = vld [vmem:[#allocation43_spill] sm:$0xff] }
 0x229   :  { %v1685_v62 = vpack.c.bf16 %v1615_v33, %v1615_v33  ;;  %v1906_v2 = vsel %vm1898_vm6, %v1851_v55, %v1905_v35  ;;  %v3538_v46 = vpack.c.bf16 %v3537_v16, %v3537_v16  ;;  %v1684_v5 = vpack.c.bf16 %v1608_v12, %v1608_v12  ;;  %p2683_p13 = por %p2682_p12, %p2681_p11 }
 0x22a   :  { %v1686_v6 = vpack.c.bf16 %v1622_v0, %v1622_v0  ;;  %v1916_v11 = vsel %vm1890_vm2, %v3540_v60, %v3539_v54  ;;  %v1944_v23 = vsel %vm1890_vm2, %v3312_v9, %v3292_v49  ;;  %v1882_v3 = vunpack.c.l.b16 %v1683_v61  ;;  %v3544_v9 = vld [vmem:[#allocation38_spill] sm:$0xff] }
 0x22b   :  { %v1853_v53 = vunpack.c.l.b16 %v3538_v46  ;;  %v1884_v50 = vunpack.c.l.b16 %v1685_v62  ;;  %v1917_v39 = vsel %vm1892_vm3, %v3541_v45, %v1916_v11  ;;  %v1945_v36 = vsel %vm1892_vm3, %v3338_v17, %v1944_v23  ;;  %p2684_p0 = pnand %p2683_p13, %p2677_p10 }
 0x22c   :  { %v1883_v30 = vunpack.c.l.b16 %v1684_v5  ;;  %v1885_v41 = vunpack.c.l.b16 %v1686_v6  ;;  %v1918_v28 = vsel %vm1894_vm4, %v3542_v1, %v1917_v39  ;;  %v1946_v59 = vsel %vm1894_vm4, %v3362_v48, %v1945_v36 }
 0x22d   :  { %v1919_v18 = vsel %vm1896_vm5, %v3543_v20, %v1918_v28  ;;  %v1947_v49 = vsel %vm1896_vm5, %v1881_v22, %v1946_v59  ;;  %v1899_v40 = vsel %vm1898_vm6, %v3545_v10, %v3544_v9  ;;  %v1927_v47 = vsel %vm1898_vm6, %v1882_v3, %v1926_v56 }
 0x22e   :  { %v1934_v17 = vsel %vm1898_vm6, %v1883_v30, %v1933_v38  ;;  %v1920_v15 = vsel %vm1898_vm6, %v1853_v53, %v1919_v18  ;;  %v1948_v26 = vsel %vm1898_vm6, %v1885_v41, %v1947_v49  ;;  %v1949_v14 = vpack.c.b16 %v1927_v47, %v1899_v40 }
 0x22f   :  { %v1950_v8 = vpack.c.b16 %v1934_v17, %v1906_v2  ;;  %v1952_v48 = vpack.c.b16 %v1948_v26, %v1920_v15  ;;  %v1913_v63 = vsel %vm1898_vm6, %v3547_v44, %v3546_v7  ;;  %v1941_v22 = vsel %vm1898_vm6, %v1884_v50, %v1940_v24 }
 0x230   :  { %v1951_v25 = vpack.c.b16 %v1941_v22, %v1913_v63 }
 0x231   :  { %2181 = vmatprep.mubr.bf16.mxu0 %v1950_v8  ;;  %2222 = vmatprep.mubr.bf16.mxu1 %v1952_v48 }
 0x232   :  { %2182 = vmatmul.mubr.bf16.vlgmr.msra.gmra.mrb[64].mxu0 %v1949_v14  ;;  %2223 = vmatmul.mubr.bf16.vlgmr.msra.gmra.mrb[64].mxu1 %v1951_v25 }
 0x305   :  { %v2396_v56 = vpop.f32.mrb[64].mxu0  ;;  %v2418_v55 = vpop.f32.mrb[64].mxu1 }
 0x306   :  { %v2397_v57 = vpop.f32.mrb[65].mxu0  ;;  %v2419_v32 = vpop.f32.mrb[65].mxu1 }
 0x307   :  { %v2398_v34 = vadd.f32 %v2397_v57, %v2396_v56  ;;  %v2420_v42 = vadd.f32 %v2419_v32, %v2418_v55  ;;  %v2399_v31 = vpop.f32.mrb[66].mxu0  ;;  %v2421_v4 = vpop.f32.mrb[66].mxu1 }
 0x308   :  { %v2400_v21 = vpop.f32.mrb[67].mxu0  ;;  %v2422_v13 = vpop.f32.mrb[67].mxu1 }
 0x309   :  { %v2184_v24 = vadd.f32 %v2398_v34, %v2347_v58  ;;  %v2401_v43 = vadd.f32 %v2400_v21, %v2399_v31  ;;  %v2423_v29 = vadd.f32 %v2422_v13, %v2421_v4 }
 0x30b   :  { %v2225_v27 = vadd.f32 %v2420_v42, %v2184_v24  ;;  %v2187_v33 = vadd.f32 %v2401_v43, %v2347_v58 }
 0x30d   :  { %2231 = vst [vmem:[#allocation8] sm:$0xff] %v2225_v27  ;;  %v2228_v37 = vadd.f32 %v2423_v29, %v2187_v33 }
 0x30f   :  { %2232 = vst [vmem:[#allocation8 + $0x8] sm:$0xff] %v2228_v37 }
 0x310   :  { %2687 = shalt.err (!%p2684_p0)
}
 0x311   :  { %s2688_s14 = scalar_lea.hbm %s3465_s5, 256 }
 0x312   :  { %p2689_p1 = scmp.ne.s32.totalorder %s3465_s5, %s2688_s14  ;;  %p2692_p2 = scmp.lt.u32.totalorder %s2688_s14, %s3465_s5 }
 0x314   :  { %p2694_p3 = pnand %p2692_p2, %p2689_p1 }
 0x316   :  { %2697 = shalt.err (!%p2694_p3)
}
 0x317   :  { %2244 = dma.vmem_to_hbm [thread:$0]  %s2239_s11, 256, %s3465_s5, [#allocation4], %s2708_s1, %s2708_s1, %s2709_s17  }
 0x318   :  { %2702 = dma.done.wait [#allocation4], 256  }
 0x319   :  { %2703 = vsyncadd [#allocation4], 4294967040 }
 0x31a   :  { %2248 = vsyncpa [#allocation3], 1 }
 0x31b   :  { %2249 = vsyncpa [#allocation6], 1 }
 0x31c   :  { %2250 = vsyncpa [#allocation4], 1 }

</bundles_post_ra>
